<compile_context>
chip_gen: v5e
topology: v5e:2x2
jax: 0.10.0
libtpu: 0.0.40
codegen_flags: <defaults>
</compile_context>

<pallas_src>
import functools
import math

import jax
import jax.numpy as jnp
from jax import lax
from jax.experimental import pallas as pl
from jax.experimental.pallas import tpu as pltpu


# ---------------------------------------------------------------------------
# In-kernel math: regularized incomplete beta I_x(a, b) with a, b constants.
# ---------------------------------------------------------------------------
def _beta_cf_coeffs(a, b, iters):
    """Trace-time CF term coefficients d_1, d_2, ... for I_x(a, b)
    (Numerical-Recipes betacf ordering: d_1, even_1, odd_1, even_2, ...)."""
    terms = [-(a + b) / (a + 1.0)]
    for m in range(1, iters + 1):
        terms.append(m * (b - m) / ((a - 1.0 + 2.0 * m) * (a + 2.0 * m)))
        terms.append(-(a + m) * (a + b + m)
                     / ((a + 2.0 * m) * (a + 1.0 + 2.0 * m)))
    return terms


def _recip_nr(v):
    # Approximate reciprocal (EUP slot) + one Newton-Raphson refinement.
    # Used exactly once per element (final CF normalization), so the 3 extra
    # VALU ops are negligible and keep the compounded error ~f32 roundoff.
    r = pl.reciprocal(v, approx=True)
    return r * (2.0 - v * r)


def _betainc_const_ab(x, a, b, iters):
    """Elementwise I_x(a, b) for Python-float a, b.

    Single mask-blended continued-fraction chain, evaluated with the
    divide-free forward recurrence on the convergents A_m / B_m
    (mul/add only in the unrolled loop; one reciprocal at the end)."""
    eps = 1e-7
    xc = jnp.clip(x, eps, 1.0 - eps)
    log_beta_ab = math.lgamma(a) + math.lgamma(b) - math.lgamma(a + b)
    bt = jnp.exp(a * jnp.log(xc) + b * jnp.log(1.0 - xc) - log_beta_ab)

    # Branch selection: direct CF for I_x(a,b) below the split point,
    # reflected CF for I_{1-x}(b,a) above it.  bt is symmetric in the swap.
    use_direct = xc < (a + 1.0) / (a + b + 2.0)
    x_sel = jnp.where(use_direct, xc, 1.0 - xc)

    t1 = _beta_cf_coeffs(a, b, iters)   # coefficients for (a, b)
    t2 = _beta_cf_coeffs(b, a, iters)   # coefficients for (b, a)

    # Forward (Wallis) recurrence for f = 1/(1 + d1/(1 + d2/(1 + ...))):
    #   A_1 = 1, B_1 = 1 ; A_2 = 1, B_2 = 1 + d1
    #   A_k = A_{k-1} + d_{k-1} A_{k-2},  B_k = B_{k-1} + d_{k-1} B_{k-2}
    # No per-step division, no _safe clamps; coefficients stay O(1) and B_m
    # only decays geometrically, so no rescaling is needed for <= ~25 terms.
    d = jnp.where(use_direct, t1[0], t2[0]) * x_sel
    num_p = jnp.ones_like(x_sel)          # A_1
    den_p = jnp.ones_like(x_sel)          # B_1
    num = jnp.ones_like(x_sel)            # A_2
    den = 1.0 + d                         # B_2
    for k in range(1, len(t1)):           # statically unrolled (24 terms)
        d = jnp.where(use_direct, t1[k], t2[k]) * x_sel
        num, num_p = num + d * num_p, num
        den, den_p = den + d * den_p, den

    f = num * _recip_nr(den)
    prefac = jnp.where(use_direct, 1.0 / a, 1.0 / b)
    val = bt * f * prefac
    res = jnp.where(use_direct, val, 1.0 - val)
    res = jnp.where(x <= 0.0, 0.0, jnp.where(x >= 1.0, 1.0, res))
    return res


# ---------------------------------------------------------------------------
# Pallas kernel: per column-tile, Beta CDF vs. ECDF, squared error, per-lane
# partial sum (lane-dense output; final reduce + /n in the wrapper).
# ---------------------------------------------------------------------------
def _bs_loss_kernel(x_ref, out_ref, *, alpha, beta, inv_np1, cf_iters,
                    ranks_in_kernel):
    x = x_ref[...].astype(jnp.float32)           # (N, TH)
    nb, hb = x.shape

    cdf = _betainc_const_ab(x, alpha, beta, cf_iters)

    if ranks_in_kernel:
        # rank_i = #{k : x_k < x_i  or  (x_k == x_i and k < i)}   (per column)
        # int32 accumulation, single cast at the end (perf-review micro-trim).
        row = lax.broadcasted_iota(jnp.int32, (nb, hb), 0)
        rank = jnp.zeros((nb, hb), jnp.int32)
        for k in range(nb):                      # N is small; statically unrolled
            xk = x[k:k + 1, :]                   # sublane broadcast of row k
            before = jnp.logical_or(xk < x, jnp.logical_and(xk == x, row > k))
            rank = rank + before.astype(jnp.int32)
        rank_f = rank.astype(jnp.float32)
    else:
        # Rows were pre-sorted along axis 0; rank is just the row index.
        rank_f = lax.broadcasted_iota(jnp.int32, (nb, hb), 0).astype(jnp.float32)

    diff = cdf - (rank_f + 1.0) * inv_np1
    out_ref[...] = jnp.sum(diff * diff, axis=0, keepdims=True)   # (1, TH)


def _pick_tile_h(n, h, max_tile=512, elem_budget=6144):
    """Largest multiple of 128 dividing h under a live-vreg budget, preferring
    >= 2 grid tiles so dual-TC parts (v7x) keep both TensorCores busy."""
    if h % 128 != 0:
        return h                        # block == full array dims is always legal
    cap = max(128, min(max_tile, (elem_budget // max(n, 8) // 128) * 128))
    divs = [t for t in range(128, h + 1, 128) if h % t == 0]
    ok = [t for t in divs if t <= cap] or [divs[0]]
    two_plus = [t for t in ok if h // t >= 2]
    return max(two_plus) if two_plus else max(ok)


def batch_shaping_loss(x, alpha=0.6, beta=0.4, tile_h=None, cf_iters=12):
    """Pallas implementation of BatchShapingLossModuleOld.forward(x, mask=None)."""
    # TODO(synk): the mask!=None column-dropping path needs a dynamic output
    # shape and is not expressible in a static Pallas grid; only mask=None here.
    n, h = x.shape
    if tile_h is None:
        tile_h = _pick_tile_h(n, h)
    assert h % tile_h == 0

    ranks_in_kernel = n <= 128
    if ranks_in_kernel:
        xin = x.astype(jnp.float32)                        # no sort needed
    else:
        xin = jnp.sort(x.astype(jnp.float32), axis=0)      # glue for large N

    kernel = functools.partial(
        _bs_loss_kernel,
        alpha=float(alpha),
        beta=float(beta),
        inv_np1=float(1.0 / (n + 1.0)),
        cf_iters=int(cf_iters),
        ranks_in_kernel=ranks_in_kernel,
    )

    partials = pl.pallas_call(
        kernel,
        out_shape=jax.ShapeDtypeStruct((1, h), jnp.float32),
        grid_spec=pltpu.PrefetchScalarGridSpec(
            num_scalar_prefetch=0,
            grid=(h // tile_h,),
            in_specs=[pl.BlockSpec((n, tile_h), lambda j: (0, j))],
            out_specs=pl.BlockSpec((1, tile_h), lambda j: (0, j)),
        ),
        compiler_params=pltpu.CompilerParams(
            dimension_semantics=("parallel",),   # per-tile outputs -> no race
        ),
    )(xin)

    return jnp.sum(partials) * (1.0 / n)


# ---------------------------------------------------------------------------
# Pure-JAX reference (same math as the PyTorch module, via jax.scipy betainc)
# ---------------------------------------------------------------------------
def _ref_loss(x, alpha=0.6, beta=0.4):
    n = x.shape[0]
    xs = jnp.sort(x.astype(jnp.float32), axis=0)
    ecdf = (jnp.arange(1, n + 1, dtype=jnp.float32) / (n + 1.0))[:, None]
    cdf = jax.scipy.special.betainc(alpha, beta, jnp.clip(xs, 0.0, 1.0))
    return jnp.sum((cdf - ecdf) ** 2) / n


if __name__ == "__main__":
    key = jax.random.PRNGKey(0)
    # Gate probabilities in (0, 1): N=16 batch rows, H=512 gate columns.
    x = jax.random.uniform(key, (16, 512), dtype=jnp.float32,
                           minval=0.0, maxval=1.0)

    loss = batch_shaping_loss(x, alpha=0.6, beta=0.4)
    loss = jax.block_until_ready(loss)

    ref = jax.block_until_ready(_ref_loss(x, 0.6, 0.4))
    assert jnp.isfinite(loss), "non-finite loss"
    tol = 2e-3 * max(1.0, abs(float(ref)))
    assert abs(float(loss) - float(ref)) < tol, (float(loss), float(ref))

    print("KERNEL_OK")
</pallas_src>

<mosaic_0001>
module attributes {stable_mosaic.version = 11 : i64} {
  func.func @_bs_loss_kernel(%arg0: i32, %arg1: memref<16x256xf32, #tpu.memory_space<vmem>>, %arg2: memref<1x256xf32, #tpu.memory_space<vmem>>) attributes {dimension_semantics = [#tpu.dimension_semantics<parallel>], iteration_bounds = array<i64: 2>, scalar_prefetch = 0 : i64, scratch_operands = 0 : i64, tpu.core_type = #tpu.core_type<tc>, window_params = [{transform_indices = @transform_0, window_bounds = array<i64: 16, 256>}, {transform_indices = @transform_1, window_bounds = array<i64: 1, 256>}]} {
    %c0 = arith.constant 0 : index
    %c0_0 = arith.constant 0 : index
    %0 = vector.load %arg1[%c0, %c0_0] : memref<16x256xf32, #tpu.memory_space<vmem>>, vector<16x256xf32>
    %cst = arith.constant 1.000000e-07 : f32
    %cst_1 = arith.constant 0.99999988 : f32
    %1 = vector.broadcast %cst : f32 to vector<16x256xf32>
    %2 = arith.maximumf %1, %0 : vector<16x256xf32>
    %3 = vector.broadcast %cst_1 : f32 to vector<16x256xf32>
    %4 = arith.minimumf %3, %2 : vector<16x256xf32>
    %5 = math.log %4 : vector<16x256xf32>
    %cst_2 = arith.constant 6.000000e-01 : f32
    %6 = vector.broadcast %cst_2 : f32 to vector<16x256xf32>
    %7 = arith.mulf %6, %5 : vector<16x256xf32>
    %cst_3 = arith.constant 1.000000e+00 : f32
    %8 = vector.broadcast %cst_3 : f32 to vector<16x256xf32>
    %9 = arith.subf %8, %4 : vector<16x256xf32>
    %10 = math.log %9 : vector<16x256xf32>
    %cst_4 = arith.constant 4.000000e-01 : f32
    %11 = vector.broadcast %cst_4 : f32 to vector<16x256xf32>
    %12 = arith.mulf %11, %10 : vector<16x256xf32>
    %13 = arith.addf %7, %12 : vector<16x256xf32>
    %cst_5 = arith.constant 1.19491172 : f32
    %14 = vector.broadcast %cst_5 : f32 to vector<16x256xf32>
    %15 = arith.subf %13, %14 : vector<16x256xf32>
    %16 = math.exp %15 : vector<16x256xf32>
    %cst_6 = arith.constant 0.533333361 : f32
    %17 = vector.broadcast %cst_6 : f32 to vector<16x256xf32>
    %18 = arith.cmpf olt, %4, %17 : vector<16x256xf32>
    %cst_7 = arith.constant 1.000000e+00 : f32
    %19 = vector.broadcast %cst_7 : f32 to vector<16x256xf32>
    %20 = arith.subf %19, %4 : vector<16x256xf32>
    %21 = arith.select %18, %4, %20 : vector<16x256xi1>, vector<16x256xf32>
    %cst_8 = arith.constant -6.250000e-01 : f32
    %cst_9 = arith.constant -0.714285731 : f32
    %22 = vector.broadcast %cst_8 : f32 to vector<16x256xf32>
    %23 = vector.broadcast %cst_9 : f32 to vector<16x256xf32>
    %24 = arith.select %18, %22, %23 : vector<16x256xi1>, vector<16x256xf32>
    %25 = arith.mulf %24, %21 : vector<16x256xf32>
    %cst_10 = arith.constant 1.000000e+00 : f32
    %26 = vector.broadcast %cst_10 : f32 to vector<16x256xf32>
    %cst_11 = arith.constant 1.000000e+00 : f32
    %27 = vector.broadcast %cst_11 : f32 to vector<16x256xf32>
    %cst_12 = arith.constant 1.000000e+00 : f32
    %28 = vector.broadcast %cst_12 : f32 to vector<16x256xf32>
    %cst_13 = arith.constant 1.000000e+00 : f32
    %29 = vector.broadcast %cst_13 : f32 to vector<16x256xf32>
    %30 = arith.addf %29, %25 : vector<16x256xf32>
    %cst_14 = arith.constant -0.144230768 : f32
    %cst_15 = arith.constant -0.119047619 : f32
    %31 = vector.broadcast %cst_14 : f32 to vector<16x256xf32>
    %32 = vector.broadcast %cst_15 : f32 to vector<16x256xf32>
    %33 = arith.select %18, %31, %32 : vector<16x256xi1>, vector<16x256xf32>
    %34 = arith.mulf %33, %21 : vector<16x256xf32>
    %35 = arith.mulf %34, %26 : vector<16x256xf32>
    %36 = arith.addf %28, %35 : vector<16x256xf32>
    %37 = arith.mulf %34, %27 : vector<16x256xf32>
    %38 = arith.addf %30, %37 : vector<16x256xf32>
    %cst_16 = arith.constant -0.341880351 : f32
    %cst_17 = arith.constant -0.343137264 : f32
    %39 = vector.broadcast %cst_16 : f32 to vector<16x256xf32>
    %40 = vector.broadcast %cst_17 : f32 to vector<16x256xf32>
    %41 = arith.select %18, %39, %40 : vector<16x256xi1>, vector<16x256xf32>
    %42 = arith.mulf %41, %21 : vector<16x256xf32>
    %43 = arith.mulf %42, %28 : vector<16x256xf32>
    %44 = arith.addf %36, %43 : vector<16x256xf32>
    %45 = arith.mulf %42, %30 : vector<16x256xf32>
    %46 = arith.addf %38, %45 : vector<16x256xf32>
    %cst_18 = arith.constant -0.193236709 : f32
    %cst_19 = arith.constant -0.187165782 : f32
    %47 = vector.broadcast %cst_18 : f32 to vector<16x256xf32>
    %48 = vector.broadcast %cst_19 : f32 to vector<16x256xf32>
    %49 = arith.select %18, %47, %48 : vector<16x256xi1>, vector<16x256xf32>
    %50 = arith.mulf %49, %21 : vector<16x256xf32>
    %51 = arith.mulf %50, %36 : vector<16x256xf32>
    %52 = arith.addf %44, %51 : vector<16x256xf32>
    %53 = arith.mulf %50, %38 : vector<16x256xf32>
    %54 = arith.addf %46, %53 : vector<16x256xf32>
    %cst_20 = arith.constant -0.302795023 : f32
    %cst_21 = arith.constant -0.303030312 : f32
    %55 = vector.broadcast %cst_20 : f32 to vector<16x256xf32>
    %56 = vector.broadcast %cst_21 : f32 to vector<16x256xf32>
    %57 = arith.select %18, %55, %56 : vector<16x256xi1>, vector<16x256xf32>
    %58 = arith.mulf %57, %21 : vector<16x256xf32>
    %59 = arith.mulf %58, %44 : vector<16x256xf32>
    %60 = arith.addf %52, %59 : vector<16x256xf32>
    %61 = arith.mulf %58, %46 : vector<16x256xf32>
    %62 = arith.addf %54, %61 : vector<16x256xf32>
    %cst_22 = arith.constant -0.211038962 : f32
    %cst_23 = arith.constant -0.208333328 : f32
    %63 = vector.broadcast %cst_22 : f32 to vector<16x256xf32>
    %64 = vector.broadcast %cst_23 : f32 to vector<16x256xf32>
    %65 = arith.select %18, %63, %64 : vector<16x256xi1>, vector<16x256xf32>
    %66 = arith.mulf %65, %21 : vector<16x256xf32>
    %67 = arith.mulf %66, %52 : vector<16x256xf32>
    %68 = arith.addf %60, %67 : vector<16x256xf32>
    %69 = arith.mulf %66, %54 : vector<16x256xf32>
    %70 = arith.addf %62, %69 : vector<16x256xf32>
    %cst_24 = arith.constant -0.287081331 : f32
    %cst_25 = arith.constant -0.287162155 : f32
    %71 = vector.broadcast %cst_24 : f32 to vector<16x256xf32>
    %72 = vector.broadcast %cst_25 : f32 to vector<16x256xf32>
    %73 = arith.select %18, %71, %72 : vector<16x256xi1>, vector<16x256xf32>
    %74 = arith.mulf %73, %21 : vector<16x256xf32>
    %75 = arith.mulf %74, %60 : vector<16x256xf32>
    %76 = arith.addf %68, %75 : vector<16x256xf32>
    %77 = arith.mulf %74, %62 : vector<16x256xf32>
    %78 = arith.addf %70, %77 : vector<16x256xf32>
    %cst_26 = arith.constant -0.220318243 : f32
    %cst_27 = arith.constant -0.218790218 : f32
    %79 = vector.broadcast %cst_26 : f32 to vector<16x256xf32>
    %80 = vector.broadcast %cst_27 : f32 to vector<16x256xf32>
    %81 = arith.select %18, %79, %80 : vector<16x256xi1>, vector<16x256xf32>
    %82 = arith.mulf %81, %21 : vector<16x256xf32>
    %83 = arith.mulf %82, %68 : vector<16x256xf32>
    %84 = arith.addf %76, %83 : vector<16x256xf32>
    %85 = arith.mulf %82, %70 : vector<16x256xf32>
    %86 = arith.addf %78, %85 : vector<16x256xf32>
    %cst_28 = arith.constant -0.278585285 : f32
    %cst_29 = arith.constant -0.278622091 : f32
    %87 = vector.broadcast %cst_28 : f32 to vector<16x256xf32>
    %88 = vector.broadcast %cst_29 : f32 to vector<16x256xf32>
    %89 = arith.select %18, %87, %88 : vector<16x256xi1>, vector<16x256xf32>
    %90 = arith.mulf %89, %21 : vector<16x256xf32>
    %91 = arith.mulf %90, %76 : vector<16x256xf32>
    %92 = arith.addf %84, %91 : vector<16x256xf32>
    %93 = arith.mulf %90, %78 : vector<16x256xf32>
    %94 = arith.addf %86, %93 : vector<16x256xf32>
    %cst_30 = arith.constant -0.22602202 : f32
    %cst_31 = arith.constant -0.225040913 : f32
    %95 = vector.broadcast %cst_30 : f32 to vector<16x256xf32>
    %96 = vector.broadcast %cst_31 : f32 to vector<16x256xf32>
    %97 = arith.select %18, %95, %96 : vector<16x256xi1>, vector<16x256xf32>
    %98 = arith.mulf %97, %21 : vector<16x256xf32>
    %99 = arith.mulf %98, %84 : vector<16x256xf32>
    %100 = arith.addf %92, %99 : vector<16x256xf32>
    %101 = arith.mulf %98, %86 : vector<16x256xf32>
    %102 = arith.addf %94, %101 : vector<16x256xf32>
    %cst_32 = arith.constant -0.27325961 : f32
    %cst_33 = arith.constant -0.273279339 : f32
    %103 = vector.broadcast %cst_32 : f32 to vector<16x256xf32>
    %104 = vector.broadcast %cst_33 : f32 to vector<16x256xf32>
    %105 = arith.select %18, %103, %104 : vector<16x256xi1>, vector<16x256xf32>
    %106 = arith.mulf %105, %21 : vector<16x256xf32>
    %107 = arith.mulf %106, %92 : vector<16x256xf32>
    %108 = arith.addf %100, %107 : vector<16x256xf32>
    %109 = arith.mulf %106, %94 : vector<16x256xf32>
    %110 = arith.addf %102, %109 : vector<16x256xf32>
    %cst_34 = arith.constant -0.229885057 : f32
    %cst_35 = arith.constant -0.229202032 : f32
    %111 = vector.broadcast %cst_34 : f32 to vector<16x256xf32>
    %112 = vector.broadcast %cst_35 : f32 to vector<16x256xf32>
    %113 = arith.select %18, %111, %112 : vector<16x256xi1>, vector<16x256xf32>
    %114 = arith.mulf %113, %21 : vector<16x256xf32>
    %115 = arith.mulf %114, %100 : vector<16x256xf32>
    %116 = arith.addf %108, %115 : vector<16x256xf32>
    %117 = arith.mulf %114, %102 : vector<16x256xf32>
    %118 = arith.addf %110, %117 : vector<16x256xf32>
    %cst_36 = arith.constant -0.269607842 : f32
    %cst_37 = arith.constant -0.269619644 : f32
    %119 = vector.broadcast %cst_36 : f32 to vector<16x256xf32>
    %120 = vector.broadcast %cst_37 : f32 to vector<16x256xf32>
    %121 = arith.select %18, %119, %120 : vector<16x256xi1>, vector<16x256xf32>
    %122 = arith.mulf %121, %21 : vector<16x256xf32>
    %123 = arith.mulf %122, %108 : vector<16x256xf32>
    %124 = arith.addf %116, %123 : vector<16x256xf32>
    %125 = arith.mulf %122, %110 : vector<16x256xf32>
    %126 = arith.addf %118, %125 : vector<16x256xf32>
    %cst_38 = arith.constant -0.232675269 : f32
    %cst_39 = arith.constant -0.232172474 : f32
    %127 = vector.broadcast %cst_38 : f32 to vector<16x256xf32>
    %128 = vector.broadcast %cst_39 : f32 to vector<16x256xf32>
    %129 = arith.select %18, %127, %128 : vector<16x256xi1>, vector<16x256xf32>
    %130 = arith.mulf %129, %21 : vector<16x256xf32>
    %131 = arith.mulf %130, %116 : vector<16x256xf32>
    %132 = arith.addf %124, %131 : vector<16x256xf32>
    %133 = arith.mulf %130, %118 : vector<16x256xf32>
    %134 = arith.addf %126, %133 : vector<16x256xf32>
    %cst_40 = arith.constant -0.266947657 : f32
    %cst_41 = arith.constant -0.266955256 : f32
    %135 = vector.broadcast %cst_40 : f32 to vector<16x256xf32>
    %136 = vector.broadcast %cst_41 : f32 to vector<16x256xf32>
    %137 = arith.select %18, %135, %136 : vector<16x256xi1>, vector<16x256xf32>
    %138 = arith.mulf %137, %21 : vector<16x256xf32>
    %139 = arith.mulf %138, %124 : vector<16x256xf32>
    %140 = arith.addf %132, %139 : vector<16x256xf32>
    %141 = arith.mulf %138, %126 : vector<16x256xf32>
    %142 = arith.addf %134, %141 : vector<16x256xf32>
    %cst_42 = arith.constant -0.234785289 : f32
    %cst_43 = arith.constant -0.234399751 : f32
    %143 = vector.broadcast %cst_42 : f32 to vector<16x256xf32>
    %144 = vector.broadcast %cst_43 : f32 to vector<16x256xf32>
    %145 = arith.select %18, %143, %144 : vector<16x256xi1>, vector<16x256xf32>
    %146 = arith.mulf %145, %21 : vector<16x256xf32>
    %147 = arith.mulf %146, %132 : vector<16x256xf32>
    %148 = arith.addf %140, %147 : vector<16x256xf32>
    %149 = arith.mulf %146, %134 : vector<16x256xf32>
    %150 = arith.addf %142, %149 : vector<16x256xf32>
    %cst_44 = arith.constant -0.264923334 : f32
    %cst_45 = arith.constant -0.26492852 : f32
    %151 = vector.broadcast %cst_44 : f32 to vector<16x256xf32>
    %152 = vector.broadcast %cst_45 : f32 to vector<16x256xf32>
    %153 = arith.select %18, %151, %152 : vector<16x256xi1>, vector<16x256xf32>
    %154 = arith.mulf %153, %21 : vector<16x256xf32>
    %155 = arith.mulf %154, %140 : vector<16x256xf32>
    %156 = arith.addf %148, %155 : vector<16x256xf32>
    %157 = arith.mulf %154, %142 : vector<16x256xf32>
    %158 = arith.addf %150, %157 : vector<16x256xf32>
    %cst_46 = arith.constant -0.236436948 : f32
    %cst_47 = arith.constant -0.236131936 : f32
    %159 = vector.broadcast %cst_46 : f32 to vector<16x256xf32>
    %160 = vector.broadcast %cst_47 : f32 to vector<16x256xf32>
    %161 = arith.select %18, %159, %160 : vector<16x256xi1>, vector<16x256xf32>
    %162 = arith.mulf %161, %21 : vector<16x256xf32>
    %163 = arith.mulf %162, %148 : vector<16x256xf32>
    %164 = arith.addf %156, %163 : vector<16x256xf32>
    %165 = arith.mulf %162, %150 : vector<16x256xf32>
    %166 = arith.addf %158, %165 : vector<16x256xf32>
    %cst_48 = arith.constant -0.263331145 : f32
    %cst_49 = arith.constant -0.263334841 : f32
    %167 = vector.broadcast %cst_48 : f32 to vector<16x256xf32>
    %168 = vector.broadcast %cst_49 : f32 to vector<16x256xf32>
    %169 = arith.select %18, %167, %168 : vector<16x256xi1>, vector<16x256xf32>
    %170 = arith.mulf %169, %21 : vector<16x256xf32>
    %171 = arith.mulf %170, %156 : vector<16x256xf32>
    %172 = arith.addf %164, %171 : vector<16x256xf32>
    %173 = arith.mulf %170, %158 : vector<16x256xf32>
    %174 = arith.addf %166, %173 : vector<16x256xf32>
    %cst_50 = arith.constant -0.237765014 : f32
    %cst_51 = arith.constant -0.237517685 : f32
    %175 = vector.broadcast %cst_50 : f32 to vector<16x256xf32>
    %176 = vector.broadcast %cst_51 : f32 to vector<16x256xf32>
    %177 = arith.select %18, %175, %176 : vector<16x256xi1>, vector<16x256xf32>
    %178 = arith.mulf %177, %21 : vector<16x256xf32>
    %179 = arith.mulf %178, %164 : vector<16x256xf32>
    %180 = arith.addf %172, %179 : vector<16x256xf32>
    %181 = arith.mulf %178, %166 : vector<16x256xf32>
    %182 = arith.addf %174, %181 : vector<16x256xf32>
    %cst_52 = arith.constant -0.262046039 : f32
    %cst_53 = arith.constant -0.262048751 : f32
    %183 = vector.broadcast %cst_52 : f32 to vector<16x256xf32>
    %184 = vector.broadcast %cst_53 : f32 to vector<16x256xf32>
    %185 = arith.select %18, %183, %184 : vector<16x256xi1>, vector<16x256xf32>
    %186 = arith.mulf %185, %21 : vector<16x256xf32>
    %187 = arith.mulf %186, %172 : vector<16x256xf32>
    %188 = arith.addf %180, %187 : vector<16x256xf32>
    %189 = arith.mulf %186, %174 : vector<16x256xf32>
    %190 = arith.addf %182, %189 : vector<16x256xf32>
    %cst_54 = arith.constant -0.238856107 : f32
    %cst_55 = arith.constant -0.238651529 : f32
    %191 = vector.broadcast %cst_54 : f32 to vector<16x256xf32>
    %192 = vector.broadcast %cst_55 : f32 to vector<16x256xf32>
    %193 = arith.select %18, %191, %192 : vector<16x256xi1>, vector<16x256xf32>
    %194 = arith.mulf %193, %21 : vector<16x256xf32>
    %195 = arith.mulf %194, %180 : vector<16x256xf32>
    %196 = arith.addf %188, %195 : vector<16x256xf32>
    %197 = arith.mulf %194, %182 : vector<16x256xf32>
    %198 = arith.addf %190, %197 : vector<16x256xf32>
    %cst_56 = arith.constant -0.260986954 : f32
    %cst_57 = arith.constant -2.609890e-01 : f32
    %199 = vector.broadcast %cst_56 : f32 to vector<16x256xf32>
    %200 = vector.broadcast %cst_57 : f32 to vector<16x256xf32>
    %201 = arith.select %18, %199, %200 : vector<16x256xi1>, vector<16x256xf32>
    %202 = arith.mulf %201, %21 : vector<16x256xf32>
    %203 = arith.mulf %202, %188 : vector<16x256xf32>
    %204 = arith.addf %196, %203 : vector<16x256xf32>
    %205 = arith.mulf %202, %190 : vector<16x256xf32>
    %206 = arith.addf %198, %205 : vector<16x256xf32>
    %cst_58 = arith.constant -0.239768505 : f32
    %cst_59 = arith.constant -0.239596471 : f32
    %207 = vector.broadcast %cst_58 : f32 to vector<16x256xf32>
    %208 = vector.broadcast %cst_59 : f32 to vector<16x256xf32>
    %209 = arith.select %18, %207, %208 : vector<16x256xi1>, vector<16x256xf32>
    %210 = arith.mulf %209, %21 : vector<16x256xf32>
    %211 = arith.mulf %210, %196 : vector<16x256xf32>
    %212 = arith.addf %204, %211 : vector<16x256xf32>
    %213 = arith.mulf %210, %198 : vector<16x256xf32>
    %214 = arith.addf %206, %213 : vector<16x256xf32>
    %cst_60 = arith.constant -0.260099083 : f32
    %cst_61 = arith.constant -0.260100693 : f32
    %215 = vector.broadcast %cst_60 : f32 to vector<16x256xf32>
    %216 = vector.broadcast %cst_61 : f32 to vector<16x256xf32>
    %217 = arith.select %18, %215, %216 : vector<16x256xi1>, vector<16x256xf32>
    %218 = arith.mulf %217, %21 : vector<16x256xf32>
    %219 = arith.mulf %218, %204 : vector<16x256xf32>
    %220 = arith.addf %212, %219 : vector<16x256xf32>
    %221 = arith.mulf %218, %206 : vector<16x256xf32>
    %222 = arith.addf %214, %221 : vector<16x256xf32>
    %223 = tpu.reciprocal %222 {approx = true} : vector<16x256xf32> -> vector<16x256xf32>
    %224 = arith.mulf %222, %223 : vector<16x256xf32>
    %cst_62 = arith.constant 2.000000e+00 : f32
    %225 = vector.broadcast %cst_62 : f32 to vector<16x256xf32>
    %226 = arith.subf %225, %224 : vector<16x256xf32>
    %227 = arith.mulf %223, %226 : vector<16x256xf32>
    %228 = arith.mulf %220, %227 : vector<16x256xf32>
    %cst_63 = arith.constant 1.66666663 : f32
    %cst_64 = arith.constant 2.500000e+00 : f32
    %229 = vector.broadcast %cst_63 : f32 to vector<16x256xf32>
    %230 = vector.broadcast %cst_64 : f32 to vector<16x256xf32>
    %231 = arith.select %18, %229, %230 : vector<16x256xi1>, vector<16x256xf32>
    %232 = arith.mulf %16, %228 : vector<16x256xf32>
    %233 = arith.mulf %232, %231 : vector<16x256xf32>
    %cst_65 = arith.constant 1.000000e+00 : f32
    %234 = vector.broadcast %cst_65 : f32 to vector<16x256xf32>
    %235 = arith.subf %234, %233 : vector<16x256xf32>
    %236 = arith.select %18, %233, %235 : vector<16x256xi1>, vector<16x256xf32>
    %cst_66 = arith.constant 0.000000e+00 : f32
    %237 = vector.broadcast %cst_66 : f32 to vector<16x256xf32>
    %238 = arith.cmpf ole, %0, %237 : vector<16x256xf32>
    %cst_67 = arith.constant 1.000000e+00 : f32
    %239 = vector.broadcast %cst_67 : f32 to vector<16x256xf32>
    %240 = arith.cmpf oge, %0, %239 : vector<16x256xf32>
    %cst_68 = arith.constant 1.000000e+00 : f32
    %241 = vector.broadcast %cst_68 : f32 to vector<16x256xf32>
    %242 = arith.select %240, %241, %236 : vector<16x256xi1>, vector<16x256xf32>
    %cst_69 = arith.constant 0.000000e+00 : f32
    %243 = vector.broadcast %cst_69 : f32 to vector<16x256xf32>
    %244 = arith.select %238, %243, %242 : vector<16x256xi1>, vector<16x256xf32>
    %245 = tpu.iota {dimensions = array<i32: 0>} : vector<16x256xi32>
    %c0_i32 = arith.constant 0 : i32
    %246 = vector.broadcast %c0_i32 : i32 to vector<16x256xi32>
    %247 = vector.extract_strided_slice %0 {offsets = [0, 0], sizes = [1, 256], strides = [1, 1]} : vector<16x256xf32> to vector<1x256xf32>
    %248 = vector.broadcast %247 : vector<1x256xf32> to vector<16x256xf32>
    %249 = arith.cmpf olt, %248, %0 : vector<16x256xf32>
    %250 = vector.broadcast %247 : vector<1x256xf32> to vector<16x256xf32>
    %251 = arith.cmpf oeq, %250, %0 : vector<16x256xf32>
    %c0_i32_70 = arith.constant 0 : i32
    %252 = vector.broadcast %c0_i32_70 : i32 to vector<16x256xi32>
    %253 = arith.cmpi sgt, %245, %252 : vector<16x256xi32>
    %254 = arith.andi %251, %253 : vector<16x256xi1>
    %255 = arith.ori %249, %254 : vector<16x256xi1>
    %256 = arith.extui %255 : vector<16x256xi1> to vector<16x256xi32>
    %257 = arith.addi %246, %256 : vector<16x256xi32>
    %258 = vector.extract_strided_slice %0 {offsets = [1, 0], sizes = [1, 256], strides = [1, 1]} : vector<16x256xf32> to vector<1x256xf32>
    %259 = vector.broadcast %258 : vector<1x256xf32> to vector<16x256xf32>
    %260 = arith.cmpf olt, %259, %0 : vector<16x256xf32>
    %261 = vector.broadcast %258 : vector<1x256xf32> to vector<16x256xf32>
    %262 = arith.cmpf oeq, %261, %0 : vector<16x256xf32>
    %c1_i32 = arith.constant 1 : i32
    %263 = vector.broadcast %c1_i32 : i32 to vector<16x256xi32>
    %264 = arith.cmpi sgt, %245, %263 : vector<16x256xi32>
    %265 = arith.andi %262, %264 : vector<16x256xi1>
    %266 = arith.ori %260, %265 : vector<16x256xi1>
    %267 = arith.extui %266 : vector<16x256xi1> to vector<16x256xi32>
    %268 = arith.addi %257, %267 : vector<16x256xi32>
    %269 = vector.extract_strided_slice %0 {offsets = [2, 0], sizes = [1, 256], strides = [1, 1]} : vector<16x256xf32> to vector<1x256xf32>
    %270 = vector.broadcast %269 : vector<1x256xf32> to vector<16x256xf32>
    %271 = arith.cmpf olt, %270, %0 : vector<16x256xf32>
    %272 = vector.broadcast %269 : vector<1x256xf32> to vector<16x256xf32>
    %273 = arith.cmpf oeq, %272, %0 : vector<16x256xf32>
    %c2_i32 = arith.constant 2 : i32
    %274 = vector.broadcast %c2_i32 : i32 to vector<16x256xi32>
    %275 = arith.cmpi sgt, %245, %274 : vector<16x256xi32>
    %276 = arith.andi %273, %275 : vector<16x256xi1>
    %277 = arith.ori %271, %276 : vector<16x256xi1>
    %278 = arith.extui %277 : vector<16x256xi1> to vector<16x256xi32>
    %279 = arith.addi %268, %278 : vector<16x256xi32>
    %280 = vector.extract_strided_slice %0 {offsets = [3, 0], sizes = [1, 256], strides = [1, 1]} : vector<16x256xf32> to vector<1x256xf32>
    %281 = vector.broadcast %280 : vector<1x256xf32> to vector<16x256xf32>
    %282 = arith.cmpf olt, %281, %0 : vector<16x256xf32>
    %283 = vector.broadcast %280 : vector<1x256xf32> to vector<16x256xf32>
    %284 = arith.cmpf oeq, %283, %0 : vector<16x256xf32>
    %c3_i32 = arith.constant 3 : i32
    %285 = vector.broadcast %c3_i32 : i32 to vector<16x256xi32>
    %286 = arith.cmpi sgt, %245, %285 : vector<16x256xi32>
    %287 = arith.andi %284, %286 : vector<16x256xi1>
    %288 = arith.ori %282, %287 : vector<16x256xi1>
    %289 = arith.extui %288 : vector<16x256xi1> to vector<16x256xi32>
    %290 = arith.addi %279, %289 : vector<16x256xi32>
    %291 = vector.extract_strided_slice %0 {offsets = [4, 0], sizes = [1, 256], strides = [1, 1]} : vector<16x256xf32> to vector<1x256xf32>
    %292 = vector.broadcast %291 : vector<1x256xf32> to vector<16x256xf32>
    %293 = arith.cmpf olt, %292, %0 : vector<16x256xf32>
    %294 = vector.broadcast %291 : vector<1x256xf32> to vector<16x256xf32>
    %295 = arith.cmpf oeq, %294, %0 : vector<16x256xf32>
    %c4_i32 = arith.constant 4 : i32
    %296 = vector.broadcast %c4_i32 : i32 to vector<16x256xi32>
    %297 = arith.cmpi sgt, %245, %296 : vector<16x256xi32>
    %298 = arith.andi %295, %297 : vector<16x256xi1>
    %299 = arith.ori %293, %298 : vector<16x256xi1>
    %300 = arith.extui %299 : vector<16x256xi1> to vector<16x256xi32>
    %301 = arith.addi %290, %300 : vector<16x256xi32>
    %302 = vector.extract_strided_slice %0 {offsets = [5, 0], sizes = [1, 256], strides = [1, 1]} : vector<16x256xf32> to vector<1x256xf32>
    %303 = vector.broadcast %302 : vector<1x256xf32> to vector<16x256xf32>
    %304 = arith.cmpf olt, %303, %0 : vector<16x256xf32>
    %305 = vector.broadcast %302 : vector<1x256xf32> to vector<16x256xf32>
    %306 = arith.cmpf oeq, %305, %0 : vector<16x256xf32>
    %c5_i32 = arith.constant 5 : i32
    %307 = vector.broadcast %c5_i32 : i32 to vector<16x256xi32>
    %308 = arith.cmpi sgt, %245, %307 : vector<16x256xi32>
    %309 = arith.andi %306, %308 : vector<16x256xi1>
    %310 = arith.ori %304, %309 : vector<16x256xi1>
    %311 = arith.extui %310 : vector<16x256xi1> to vector<16x256xi32>
    %312 = arith.addi %301, %311 : vector<16x256xi32>
    %313 = vector.extract_strided_slice %0 {offsets = [6, 0], sizes = [1, 256], strides = [1, 1]} : vector<16x256xf32> to vector<1x256xf32>
    %314 = vector.broadcast %313 : vector<1x256xf32> to vector<16x256xf32>
    %315 = arith.cmpf olt, %314, %0 : vector<16x256xf32>
    %316 = vector.broadcast %313 : vector<1x256xf32> to vector<16x256xf32>
    %317 = arith.cmpf oeq, %316, %0 : vector<16x256xf32>
    %c6_i32 = arith.constant 6 : i32
    %318 = vector.broadcast %c6_i32 : i32 to vector<16x256xi32>
    %319 = arith.cmpi sgt, %245, %318 : vector<16x256xi32>
    %320 = arith.andi %317, %319 : vector<16x256xi1>
    %321 = arith.ori %315, %320 : vector<16x256xi1>
    %322 = arith.extui %321 : vector<16x256xi1> to vector<16x256xi32>
    %323 = arith.addi %312, %322 : vector<16x256xi32>
    %324 = vector.extract_strided_slice %0 {offsets = [7, 0], sizes = [1, 256], strides = [1, 1]} : vector<16x256xf32> to vector<1x256xf32>
    %325 = vector.broadcast %324 : vector<1x256xf32> to vector<16x256xf32>
    %326 = arith.cmpf olt, %325, %0 : vector<16x256xf32>
    %327 = vector.broadcast %324 : vector<1x256xf32> to vector<16x256xf32>
    %328 = arith.cmpf oeq, %327, %0 : vector<16x256xf32>
    %c7_i32 = arith.constant 7 : i32
    %329 = vector.broadcast %c7_i32 : i32 to vector<16x256xi32>
    %330 = arith.cmpi sgt, %245, %329 : vector<16x256xi32>
    %331 = arith.andi %328, %330 : vector<16x256xi1>
    %332 = arith.ori %326, %331 : vector<16x256xi1>
    %333 = arith.extui %332 : vector<16x256xi1> to vector<16x256xi32>
    %334 = arith.addi %323, %333 : vector<16x256xi32>
    %335 = vector.extract_strided_slice %0 {offsets = [8, 0], sizes = [1, 256], strides = [1, 1]} : vector<16x256xf32> to vector<1x256xf32>
    %336 = vector.broadcast %335 : vector<1x256xf32> to vector<16x256xf32>
    %337 = arith.cmpf olt, %336, %0 : vector<16x256xf32>
    %338 = vector.broadcast %335 : vector<1x256xf32> to vector<16x256xf32>
    %339 = arith.cmpf oeq, %338, %0 : vector<16x256xf32>
    %c8_i32 = arith.constant 8 : i32
    %340 = vector.broadcast %c8_i32 : i32 to vector<16x256xi32>
    %341 = arith.cmpi sgt, %245, %340 : vector<16x256xi32>
    %342 = arith.andi %339, %341 : vector<16x256xi1>
    %343 = arith.ori %337, %342 : vector<16x256xi1>
    %344 = arith.extui %343 : vector<16x256xi1> to vector<16x256xi32>
    %345 = arith.addi %334, %344 : vector<16x256xi32>
    %346 = vector.extract_strided_slice %0 {offsets = [9, 0], sizes = [1, 256], strides = [1, 1]} : vector<16x256xf32> to vector<1x256xf32>
    %347 = vector.broadcast %346 : vector<1x256xf32> to vector<16x256xf32>
    %348 = arith.cmpf olt, %347, %0 : vector<16x256xf32>
    %349 = vector.broadcast %346 : vector<1x256xf32> to vector<16x256xf32>
    %350 = arith.cmpf oeq, %349, %0 : vector<16x256xf32>
    %c9_i32 = arith.constant 9 : i32
    %351 = vector.broadcast %c9_i32 : i32 to vector<16x256xi32>
    %352 = arith.cmpi sgt, %245, %351 : vector<16x256xi32>
    %353 = arith.andi %350, %352 : vector<16x256xi1>
    %354 = arith.ori %348, %353 : vector<16x256xi1>
    %355 = arith.extui %354 : vector<16x256xi1> to vector<16x256xi32>
    %356 = arith.addi %345, %355 : vector<16x256xi32>
    %357 = vector.extract_strided_slice %0 {offsets = [10, 0], sizes = [1, 256], strides = [1, 1]} : vector<16x256xf32> to vector<1x256xf32>
    %358 = vector.broadcast %357 : vector<1x256xf32> to vector<16x256xf32>
    %359 = arith.cmpf olt, %358, %0 : vector<16x256xf32>
    %360 = vector.broadcast %357 : vector<1x256xf32> to vector<16x256xf32>
    %361 = arith.cmpf oeq, %360, %0 : vector<16x256xf32>
    %c10_i32 = arith.constant 10 : i32
    %362 = vector.broadcast %c10_i32 : i32 to vector<16x256xi32>
    %363 = arith.cmpi sgt, %245, %362 : vector<16x256xi32>
    %364 = arith.andi %361, %363 : vector<16x256xi1>
    %365 = arith.ori %359, %364 : vector<16x256xi1>
    %366 = arith.extui %365 : vector<16x256xi1> to vector<16x256xi32>
    %367 = arith.addi %356, %366 : vector<16x256xi32>
    %368 = vector.extract_strided_slice %0 {offsets = [11, 0], sizes = [1, 256], strides = [1, 1]} : vector<16x256xf32> to vector<1x256xf32>
    %369 = vector.broadcast %368 : vector<1x256xf32> to vector<16x256xf32>
    %370 = arith.cmpf olt, %369, %0 : vector<16x256xf32>
    %371 = vector.broadcast %368 : vector<1x256xf32> to vector<16x256xf32>
    %372 = arith.cmpf oeq, %371, %0 : vector<16x256xf32>
    %c11_i32 = arith.constant 11 : i32
    %373 = vector.broadcast %c11_i32 : i32 to vector<16x256xi32>
    %374 = arith.cmpi sgt, %245, %373 : vector<16x256xi32>
    %375 = arith.andi %372, %374 : vector<16x256xi1>
    %376 = arith.ori %370, %375 : vector<16x256xi1>
    %377 = arith.extui %376 : vector<16x256xi1> to vector<16x256xi32>
    %378 = arith.addi %367, %377 : vector<16x256xi32>
    %379 = vector.extract_strided_slice %0 {offsets = [12, 0], sizes = [1, 256], strides = [1, 1]} : vector<16x256xf32> to vector<1x256xf32>
    %380 = vector.broadcast %379 : vector<1x256xf32> to vector<16x256xf32>
    %381 = arith.cmpf olt, %380, %0 : vector<16x256xf32>
    %382 = vector.broadcast %379 : vector<1x256xf32> to vector<16x256xf32>
    %383 = arith.cmpf oeq, %382, %0 : vector<16x256xf32>
    %c12_i32 = arith.constant 12 : i32
    %384 = vector.broadcast %c12_i32 : i32 to vector<16x256xi32>
    %385 = arith.cmpi sgt, %245, %384 : vector<16x256xi32>
    %386 = arith.andi %383, %385 : vector<16x256xi1>
    %387 = arith.ori %381, %386 : vector<16x256xi1>
    %388 = arith.extui %387 : vector<16x256xi1> to vector<16x256xi32>
    %389 = arith.addi %378, %388 : vector<16x256xi32>
    %390 = vector.extract_strided_slice %0 {offsets = [13, 0], sizes = [1, 256], strides = [1, 1]} : vector<16x256xf32> to vector<1x256xf32>
    %391 = vector.broadcast %390 : vector<1x256xf32> to vector<16x256xf32>
    %392 = arith.cmpf olt, %391, %0 : vector<16x256xf32>
    %393 = vector.broadcast %390 : vector<1x256xf32> to vector<16x256xf32>
    %394 = arith.cmpf oeq, %393, %0 : vector<16x256xf32>
    %c13_i32 = arith.constant 13 : i32
    %395 = vector.broadcast %c13_i32 : i32 to vector<16x256xi32>
    %396 = arith.cmpi sgt, %245, %395 : vector<16x256xi32>
    %397 = arith.andi %394, %396 : vector<16x256xi1>
    %398 = arith.ori %392, %397 : vector<16x256xi1>
    %399 = arith.extui %398 : vector<16x256xi1> to vector<16x256xi32>
    %400 = arith.addi %389, %399 : vector<16x256xi32>
    %401 = vector.extract_strided_slice %0 {offsets = [14, 0], sizes = [1, 256], strides = [1, 1]} : vector<16x256xf32> to vector<1x256xf32>
    %402 = vector.broadcast %401 : vector<1x256xf32> to vector<16x256xf32>
    %403 = arith.cmpf olt, %402, %0 : vector<16x256xf32>
    %404 = vector.broadcast %401 : vector<1x256xf32> to vector<16x256xf32>
    %405 = arith.cmpf oeq, %404, %0 : vector<16x256xf32>
    %c14_i32 = arith.constant 14 : i32
    %406 = vector.broadcast %c14_i32 : i32 to vector<16x256xi32>
    %407 = arith.cmpi sgt, %245, %406 : vector<16x256xi32>
    %408 = arith.andi %405, %407 : vector<16x256xi1>
    %409 = arith.ori %403, %408 : vector<16x256xi1>
    %410 = arith.extui %409 : vector<16x256xi1> to vector<16x256xi32>
    %411 = arith.addi %400, %410 : vector<16x256xi32>
    %412 = vector.extract_strided_slice %0 {offsets = [15, 0], sizes = [1, 256], strides = [1, 1]} : vector<16x256xf32> to vector<1x256xf32>
    %413 = vector.broadcast %412 : vector<1x256xf32> to vector<16x256xf32>
    %414 = arith.cmpf olt, %413, %0 : vector<16x256xf32>
    %415 = vector.broadcast %412 : vector<1x256xf32> to vector<16x256xf32>
    %416 = arith.cmpf oeq, %415, %0 : vector<16x256xf32>
    %c15_i32 = arith.constant 15 : i32
    %417 = vector.broadcast %c15_i32 : i32 to vector<16x256xi32>
    %418 = arith.cmpi sgt, %245, %417 : vector<16x256xi32>
    %419 = arith.andi %416, %418 : vector<16x256xi1>
    %420 = arith.ori %414, %419 : vector<16x256xi1>
    %421 = arith.extui %420 : vector<16x256xi1> to vector<16x256xi32>
    %422 = arith.addi %411, %421 : vector<16x256xi32>
    %423 = arith.sitofp %422 : vector<16x256xi32> to vector<16x256xf32>
    %cst_71 = arith.constant 1.000000e+00 : f32
    %424 = vector.broadcast %cst_71 : f32 to vector<16x256xf32>
    %425 = arith.addf %423, %424 : vector<16x256xf32>
    %cst_72 = arith.constant 0.0588235296 : f32
    %426 = vector.broadcast %cst_72 : f32 to vector<16x256xf32>
    %427 = arith.mulf %425, %426 : vector<16x256xf32>
    %428 = arith.subf %244, %427 : vector<16x256xf32>
    %429 = arith.mulf %428, %428 : vector<16x256xf32>
    %cst_73 = arith.constant dense<0.000000e+00> : vector<256xf32>
    %430 = vector.multi_reduction <add>, %429, %cst_73 [0] : vector<16x256xf32> to vector<256xf32>
    %431 = vector.shape_cast %430 : vector<256xf32> to vector<1x256xf32>
    %c0_74 = arith.constant 0 : index
    %c0_75 = arith.constant 0 : index
    %432 = vector.load %arg2[%c0_74, %c0_75] : memref<1x256xf32, #tpu.memory_space<vmem>>, vector<1x256xf32>
    tpu.vector_store %arg2[%c0_74, %c0_75], %431 {strides = array<i32>} : memref<1x256xf32, #tpu.memory_space<vmem>>, vector<1x256xf32>,
    return
  }
  func.func @transform_0(%arg0: i32) -> (i32, i32) {
    %c0_i32 = arith.constant 0 : i32
    %c0_i32_0 = arith.constant 0 : i32
    return %c0_i32, %arg0 : i32, i32
  }
  func.func @transform_1(%arg0: i32) -> (i32, i32) {
    %c0_i32 = arith.constant 0 : i32
    %c0_i32_0 = arith.constant 0 : i32
    return %c0_i32, %arg0 : i32, i32
  }
}

</mosaic_0001>

<bundles_post_ra>
// kernel: tpu_custom_call.1
= control target key start
LH: loop header
LB: loop body
LE: loop exit
PB: predicated region body
PF: predicated region fallthrough
CT: control target
= control target key end

     0   :  { %6 = vsyncpa [#allocation3], 0  ;;  %s2846_s0 = inlined_call_operand.hbm [shape: f32[16,512], index: 0, kind: input, shape index: {}]   ;;  %s2847_s1 = inlined_call_operand.hbm [shape: f32[1,512], index: 1, kind: output, shape index: {}]  }
   0x1   :  { %8 = vsyncpa [#allocation3 + $0x1], 0 }
   0x2   :  { %9 = vsyncpa [#allocation4], 0 }
   0x3   :  { %11 = vsyncpa [#allocation4 + $0x1], 0  ;;  %s1681_s6 = smov 0   ;;  %s1683_s7 = smov 0  }
   0x4   :  { %s1685_s8 = smov 0   ;;  %s1687_s9 = smov 0  }
   0x5 LB: > { %s1702_s10 = sadd.s32 4294967295, %s1639_s9   ;;  %s1413_s11 = sadd.s32 4294967294, %s1639_s9   ;;  %s1639_s9 = sphi %s1687_s9, %s2900_s9   ;;  %s1635_s8 = sphi %s1685_s8, %s2899_s8   ;;  %s1631_s7 = sphi %s1683_s7, %s2898_s7   ;;  %s1627_s6 = sphi %s1681_s6, %s2897_s6  }
   0x6   : > { %s1706_s12 = sadd.s32 1, %s1639_s9   ;;  %s24_s13 = sadd.s32 1, %s1635_s8 }
   0x7   : > { %s21_s14 = ssub.s32 %s1639_s9, %s1706_s12  ;;  %p31_p0 = scmp.ne.s32.totalorder %s1635_s8, %s1631_s7 }
   0x8   : > { %p22_p1 = scmp.eq.s32.totalorder %s21_s14, 0  ;;  %p32_p2 = scmp.eq.s32.totalorder %s1639_s9, 0 }
   0x9   : > { %p37_p3 = scmp.ne.s32.totalorder %s1631_s7, %s1627_s6  ;;  %p38_p4 = scmp.eq.s32.totalorder %s1702_s10, 0 }
   0xa   : > { %s1718_s15 = scalar_select %p22_p1, %s1635_s8, %s24_s13  }
   0xb   : > { %p1720_p5 = por %p32_p2, %p31_p0  ;;  %p1724_p6 = por %p38_p4, %p37_p3 }
   0xc   : > { %p61_p7 = scmp.eq.s32.totalorder %s1702_s10, 1  ;;  %p67_p8 = scmp.eq.s32.totalorder %s1413_s11, 1 }
   0xd   : > { %p1415_p9 = scmp.ge.s32.totalorder %s1639_s9, 2  ;;  %p1443_p10 = scmp.lt.s32.totalorder %s1639_s9, 2 }
   0xe   : > { %p1731_p11 = por %p61_p7, %p31_p0  ;;  %p1735_p12 = por %p67_p8, %p37_p3 }
   0xf   : > { %s87_s20 = sand.u32 1, %s1635_s8   ;;  %s1430_s21 = sshll.u32 %s1639_s9, 4 }
  0x10   : > { %s1416_s22 = sshll.u32 %s87_s20, 5  ;;  %s96_s25 = scalar_lea.hbm %s2846_s0, %s1430_s21 }
  0x11   : > { %s97_s26 = sshll.u32 %s96_s25, 4  ;;  %s91_s27 = scalar_lea.vmem [#allocation2], %s1416_s22  ;;  %s98_s26 = int_to_ptr.hbm [resolvable:$true] %s97_s26 }
  0x12   : > { %s99_s28 = sshll.u32 %s91_s27, 4  ;;  %p1746_p13 = pnand %p1443_p10, %p1720_p5  ;;  %s100_s28 = int_to_ptr.vmem [resolvable:$true] %s99_s28 }
  0x13   : > { %p1419_p0 = scmp.ge.s32.totalorder %s1639_s9, 1  ;;  %s88_s30 = scalar_lea.sflag [#allocation3], %s87_s20 }
  0x14   : > { %s1543_s2 = sshra.s32 %s98_s26, 4  ;;  %p1547_p2 = pneg %p1746_p13  ;;  %s1544_s2 = int_to_ptr.hbm [resolvable:$true] %s1543_s2 }
  0x15   : > { %s1545_s3 = scalar_lea.hbm %s1544_s2, 32  ;;  %s1550_s11 = scalar_lea.hbm %s2846_s0, 64 }
  0x16   : > { %p1546_p1 = scmp.ne.s32.totalorder %s1544_s2, %s1545_s3  ;;  %p1551_p5 = scmp.lt.s32.totalorder %s1544_s2, %s2846_s0 }
  0x17   : > { %p1552_p7 = scmp.lt.s32.totalorder %s1550_s11, %s1545_s3 }
  0x18   : > { %p1548_p3 = pnand %p1547_p2, %p1546_p1 }
  0x19   : > { %p1553_p8 = por %p1552_p7, %p1551_p5 }
  0x1a   : > { %p1549_p4 = pneg %p1548_p3 }
  0x1c   : > { %p1554_p10 = pnand %p1553_p8, %p1549_p4 }
  0x1e   : > { %1557 = shalt.err (!%p1554_p10)
}
  0x1f   : > { %s1641_s16 = smov 512   ;;  %s1642_s20 = smov 256  }
  0x20   : > { %s1643_s21 = smov 16   ;;  %p107_p1 = scmp.lt.s32.totalorder %s1639_s9, 3 }
  0x21   : > { %1438 = dma.hbm_to_vmem [thread:$0]  (!%p1746_p13), %s98_s26, 512, %s100_s28, %s88_s30, %s1641_s16, %s1642_s20, %s1643_s21  }
  0x22   : > { %p108_p2 = pnand %p1419_p0, %p107_p1 }
  0x23   : > { %s1765_s22 = sand.u32 (!%p108_p2), 1, %s1631_s7  }
  0x24   : > { %111 = sbr.rel (%p108_p2) target bundleno = 327 (0x147), region = 24  ;;  %s1420_s23 = sshll.u32 (!%p108_p2), %s1765_s22, 5 }
  0x25   : > { %s114_s24 = scalar_lea.sflag (!%p108_p2), [#allocation3], %s1765_s22  ;;  %s1769_s25 = scalar_lea.vmem (!%p108_p2), [#allocation2], %s1420_s23 }
  0x29   : > { %1618 = dma.done.wait (%p1724_p6), %s114_s24, 512  }
  0x2a   : > { %1620 = vsyncadd (%p1724_p6), %s114_s24, 4294966784  ;;  %v139_v0 = vld [vmem:[%s1769_s25] sm:$0xff]  ;;  %v140_v1 = vld [vmem:[%s1769_s25 + $0x8] sm:$0xff]  ;;  %v1644_v21 = vmov -0.71428573   ;;  %s1421_s17 = sshll.u32 %s1765_s22, 1 }
  0x2b   : > { %v141_v2 = vld [vmem:[%s1769_s25 + $0x10] sm:$0xff]  ;;  %v142_v3 = vld [vmem:[%s1769_s25 + $0x18] sm:$0xff]  ;;  %v143_v4 = vmax.f32 %v139_v0, 1e-07  ;;  %v144_v5 = vmax.f32 %v140_v1, 1e-07 }
  0x2c   : > { %v145_v6 = vmax.f32 %v141_v2, 1e-07  ;;  %v146_v7 = vmax.f32 %v142_v3, 1e-07  ;;  %v1645_v46 = vmov -0.11904762  }
  0x2d   : > { %v1779_v8 = vmin.f32 %v143_v4, 0.9999999  ;;  %v1781_v9 = vmin.f32 %v144_v5, 0.9999999  ;;  %v1646_v0 = vmov -0.34313726  }
  0x2e   : > { %v1783_v10 = vmin.f32 %v145_v6, 0.9999999  ;;  %v1786_v11 = vmin.f32 %v146_v7, 0.9999999  ;;  %s1427_s26 = sshll.u32 %s1702_s10, 1  ;;  %s136_s30 = scalar_lea.vmem [#allocation5], %s1421_s17 }
  0x2f   : > { %1507 = vlog2.f32 %v1779_v8  ;;  %v163_v12 = vsub.f32 1.0, %v1779_v8  ;;  %v164_v13 = vsub.f32 1.0, %v1781_v9  ;;  %vm2848_vm0 = vcmp.lt.f32.partialorder %v1779_v8, 0.53333336  ;;  %s1338_s29 = scalar_lea.hbm %s2847_s1, %s1427_s26  ;;  %s1340_s2 = sshll.u32 %s136_s30, 4  ;;  %s1341_s2 = int_to_ptr.vmem [resolvable:$true] %s1340_s2 }
  0x30   : > { %1509 = vlog2.f32 %v1781_v9  ;;  %v165_v14 = vsub.f32 1.0, %v1783_v10  ;;  %v166_v15 = vsub.f32 1.0, %v1786_v11  ;;  %vm2851_vm1 = vcmp.lt.f32.partialorder %v1781_v9, 0.53333336  ;;  %s1342_s3 = sshll.u32 %s1338_s29, 4  ;;  %s1328_s10 = scalar_lea.sflag [#allocation4], %s1765_s22  ;;  %s1343_s3 = int_to_ptr.hbm [resolvable:$true] %s1342_s3 }
  0x31   : > { %1511 = vlog2.f32 %v1783_v10  ;;  %vm2850_vm2 = vcmp.lt.f32.partialorder %v1783_v10, 0.53333336  ;;  %vm2849_vm3 = vcmp.lt.f32.partialorder %v1786_v11, 0.53333336  ;;  %v1802_v19 = vsel %vm2848_vm0, %v1779_v8, %v163_v12  ;;  %s1587_s4 = sshra.s32 %s1343_s3, 4  ;;  %s1593_s14 = scalar_lea.hbm %s2847_s1, 4  ;;  %s1588_s4 = int_to_ptr.hbm [resolvable:$true] %s1587_s4 }
  0x32   : > { %1513 = vlog2.f32 %v1786_v11  ;;  %v1807_v20 = vsel %vm2851_vm1, %v1781_v9, %v164_v13  ;;  %v203_v22 = vsel %vm2848_vm0, -0.625, %v1644_v21  ;;  %v204_v23 = vsel %vm2851_vm1, -0.625, %v1644_v21  ;;  %s1589_s5 = scalar_lea.hbm %s1588_s4, 2  ;;  %p1594_p3 = scmp.lt.s32.totalorder %s1588_s4, %s2847_s1 }
  0x33   : > { %1515 = vlog2.f32 %v163_v12  ;;  %v1816_v26 = vsel %vm2850_vm2, %v1783_v10, %v165_v14  ;;  %v1821_v27 = vsel %vm2849_vm3, %v1786_v11, %v166_v15  ;;  %v205_v28 = vsel %vm2850_vm2, -0.625, %v1644_v21  ;;  %p1590_p6 = scmp.ne.s32.totalorder %s1588_s4, %s1589_s5  ;;  %p1595_p4 = scmp.lt.s32.totalorder %s1593_s14, %s1589_s5 }
  0x34   : > { %1517 = vlog2.f32 %v164_v13  ;;  %v206_v31 = vsel %vm2849_vm3, -0.625, %v1644_v21  ;;  %v207_v32 = vmul.f32 %v203_v22, %v1802_v19  ;;  %v208_v33 = vmul.f32 %v204_v23, %v1807_v20 }
  0x35   : > { %v1508_v16 = vpop.eup %1507  ;;  %1519 = vlog2.f32 %v165_v14  ;;  %v209_v41 = vmul.f32 %v205_v28, %v1816_v26  ;;  %v210_v42 = vmul.f32 %v206_v31, %v1821_v27  ;;  %v215_v47 = vsel %vm2848_vm0, -0.14423077, %v1645_v46  ;;  %p1591_p13 = pnand %p1590_p6, %p1731_p11  ;;  %p1596_p5 = por %p1595_p4, %p1594_p3 }
  0x36   : > { %v1510_v17 = vpop.eup %1509  ;;  %1521 = vlog2.f32 %v166_v15  ;;  %v152_v30 = vmul.f32 0.6931472, %v1508_v16  ;;  %v211_v44 = vadd.f32 1.0, %v207_v32  ;;  %v212_v45 = vadd.f32 1.0, %v208_v33 }
  0x37   : > { %v1512_v18 = vpop.eup %1511  ;;  %v154_v37 = vmul.f32 0.6931472, %v1510_v17  ;;  %v216_v53 = vsel %vm2851_vm1, -0.14423077, %v1645_v46  ;;  %v217_v56 = vsel %vm2850_vm2, -0.14423077, %v1645_v46  ;;  %v219_v60 = vmul.f32 %v215_v47, %v1802_v19  ;;  %p1592_p0 = pneg %p1591_p13 }
  0x38   : > { %v1514_v24 = vpop.eup %1513  ;;  %v156_v39 = vmul.f32 0.6931472, %v1512_v18  ;;  %v159_v43 = vmul.f32 0.6, %v152_v30  ;;  %v213_v57 = vadd.f32 1.0, %v209_v41  ;;  %v214_v58 = vadd.f32 1.0, %v210_v42 }
  0x39   : > { %v1516_v25 = vpop.eup %1515  ;;  %v158_v48 = vmul.f32 0.6931472, %v1514_v24  ;;  %v160_v51 = vmul.f32 0.6, %v154_v37  ;;  %v218_v59 = vsel %vm2849_vm3, -0.14423077, %v1645_v46  ;;  %v220_v3 = vmul.f32 %v216_v53, %v1807_v20  ;;  %p1597_p7 = pnand %p1596_p5, %p1592_p0 }
  0x3a   : > { %v1518_v29 = vpop.eup %1517  ;;  %v168_v35 = vmul.f32 0.6931472, %v1516_v25  ;;  %v161_v54 = vmul.f32 0.6, %v156_v39  ;;  %v231_v1 = vsel %vm2848_vm0, -0.34188035, %v1646_v0  ;;  %v221_v4 = vmul.f32 %v217_v56, %v1816_v26 }
  0x3b   : > { %v1520_v34 = vpop.eup %1519  ;;  %v170_v38 = vmul.f32 0.6931472, %v1518_v29  ;;  %v162_v61 = vmul.f32 0.6, %v158_v48  ;;  %v232_v5 = vsel %vm2851_vm1, -0.34188035, %v1646_v0  ;;  %v222_v7 = vmul.f32 %v218_v59, %v1821_v27 }
  0x3c   : > { %v1522_v36 = vpop.eup %1521  ;;  %v172_v40 = vmul.f32 0.6931472, %v1520_v34  ;;  %v175_v50 = vmul.f32 0.4, %v168_v35  ;;  %v223_v12 = vadd.f32 1.0, %v219_v60  ;;  %v224_v14 = vadd.f32 1.0, %v220_v3 }
  0x3d   : > { %v174_v49 = vmul.f32 0.6931472, %v1522_v36  ;;  %v176_v52 = vmul.f32 0.4, %v170_v38  ;;  %v233_v13 = vsel %vm2850_vm2, -0.34188035, %v1646_v0  ;;  %v235_v17 = vmul.f32 %v231_v1, %v1802_v19 }
  0x3e   : > { %v177_v55 = vmul.f32 0.4, %v172_v40  ;;  %v179_v63 = vadd.f32 %v175_v50, %v159_v43  ;;  %v225_v15 = vadd.f32 1.0, %v221_v4  ;;  %v234_v16 = vsel %vm2849_vm3, -0.34188035, %v1646_v0 }
  0x3f   : > { %v178_v62 = vmul.f32 0.4, %v174_v49  ;;  %v180_v2 = vadd.f32 %v176_v52, %v160_v51  ;;  %v226_v22 = vadd.f32 1.0, %v222_v7  ;;  %v236_v23 = vmul.f32 %v232_v5, %v1807_v20 }
  0x40   : > { %v181_v6 = vadd.f32 %v177_v55, %v161_v54  ;;  %v1422_v21 = vadd.f32 -1.1949117, %v179_v63  ;;  %v227_v25 = vadd.f32 %v219_v60, %v211_v44  ;;  %v228_v28 = vadd.f32 %v220_v3, %v212_v45 }
  0x41   : > { %v182_v18 = vadd.f32 %v178_v62, %v162_v61  ;;  %v1423_v24 = vadd.f32 -1.1949117, %v180_v2  ;;  %v237_v29 = vmul.f32 %v233_v13, %v1816_v26  ;;  %v229_v31 = vadd.f32 %v221_v4, %v213_v57 }
  0x42   : > { %v1854_v30 = vadd.f32 -1.1949117, %v181_v6  ;;  %v230_v32 = vadd.f32 %v222_v7, %v214_v58  ;;  %v238_v33 = vmul.f32 %v234_v16, %v1821_v27  ;;  %v243_v34 = vmul.f32 %v235_v17, %v211_v44 }
  0x43   : > { %v1647_v35 = vmov -0.18716578   ;;  %v1863_v39 = vadd.f32 -1.1949117, %v182_v18  ;;  %v187_v40 = vmul.f32 1.442695, %v1422_v21  ;;  %v244_v41 = vmul.f32 %v236_v23, %v212_v45 }
  0x44   : > { %v251_v36 = vsel %vm2848_vm0, -0.19323671, %v1647_v35  ;;  %v252_v37 = vsel %vm2851_vm1, -0.19323671, %v1647_v35  ;;  %v253_v38 = vsel %vm2850_vm2, -0.19323671, %v1647_v35  ;;  %v239_v44 = vadd.f32 %v235_v17, %v223_v12 }
  0x45   : > { %v254_v42 = vsel %vm2849_vm3, -0.19323671, %v1647_v35  ;;  %v1867_v43 = vmul.f32 1.442695, %v1423_v24  ;;  %v240_v46 = vadd.f32 %v236_v23, %v224_v14  ;;  %v245_v47 = vmul.f32 %v237_v29, %v213_v57 }
  0x46   : > { %v241_v48 = vadd.f32 %v237_v29, %v225_v15  ;;  %v255_v49 = vmul.f32 %v251_v36, %v1802_v19  ;;  %v256_v50 = vmul.f32 %v252_v37, %v1807_v20  ;;  %v257_v51 = vmul.f32 %v253_v38, %v1816_v26 }
  0x47   : > { %v242_v52 = vadd.f32 %v238_v33, %v226_v22  ;;  %v246_v53 = vmul.f32 %v238_v33, %v214_v58  ;;  %v247_v54 = vadd.f32 %v243_v34, %v227_v25  ;;  %v258_v45 = vmul.f32 %v254_v42, %v1821_v27 }
  0x48   : > { %v248_v55 = vadd.f32 %v244_v41, %v228_v28  ;;  %v259_v56 = vmul.f32 %v255_v49, %v223_v12  ;;  %v260_v59 = vmul.f32 %v256_v50, %v224_v14  ;;  %v261_v60 = vmul.f32 %v257_v51, %v225_v15 }
  0x49   : > { %v249_v61 = vadd.f32 %v245_v47, %v229_v31  ;;  %v262_v62 = vmul.f32 %v258_v45, %v226_v22  ;;  %v1648_v63 = vmov -0.3030303   ;;  %v267_v1 = vmul.f32 %v255_v49, %v227_v25 }
  0x4a   : > { %v275_v57 = vsel %vm2848_vm0, -0.30279502, %v1648_v63  ;;  %v276_v0 = vsel %vm2851_vm1, -0.30279502, %v1648_v63  ;;  %v268_v2 = vmul.f32 %v256_v50, %v228_v28  ;;  %v269_v3 = vmul.f32 %v257_v51, %v229_v31 }
  0x4b   : > { %v277_v58 = vsel %vm2850_vm2, -0.30279502, %v1648_v63  ;;  %1523 = vpow2.f32 %v187_v40  ;;  %v250_v4 = vadd.f32 %v246_v53, %v230_v32  ;;  %v270_v5 = vmul.f32 %v258_v45, %v230_v32 }
  0x4c   : > { %v278_v6 = vsel %vm2849_vm3, -0.30279502, %v1648_v63  ;;  %v263_v7 = vadd.f32 %v259_v56, %v239_v44  ;;  %v264_v12 = vadd.f32 %v260_v59, %v240_v46  ;;  %v265_v13 = vadd.f32 %v261_v60, %v241_v48 }
  0x4d   : > { %v279_v14 = vmul.f32 %v275_v57, %v1802_v19  ;;  %v266_v15 = vadd.f32 %v262_v62, %v242_v52  ;;  %v280_v16 = vmul.f32 %v276_v0, %v1807_v20  ;;  %v281_v17 = vmul.f32 %v277_v58, %v1816_v26 }
  0x4e   : > { %v271_v18 = vadd.f32 %v267_v1, %v247_v54  ;;  %v272_v21 = vadd.f32 %v268_v2, %v248_v55  ;;  %v273_v22 = vadd.f32 %v269_v3, %v249_v61  ;;  %v282_v23 = vmul.f32 %v278_v6, %v1821_v27 }
  0x4f   : > { %v283_v24 = vmul.f32 %v279_v14, %v239_v44  ;;  %v284_v25 = vmul.f32 %v280_v16, %v240_v46  ;;  %v285_v28 = vmul.f32 %v281_v17, %v241_v48  ;;  %v1649_v29 = vmov -0.20833333  }
  0x50   : > { %v299_v31 = vsel %vm2848_vm0, -0.21103896, %v1649_v29  ;;  %v286_v32 = vmul.f32 %v282_v23, %v242_v52  ;;  %v291_v33 = vmul.f32 %v279_v14, %v247_v54  ;;  %v300_v34 = vsel %vm2851_vm1, -0.21103896, %v1649_v29 }
  0x51   : > { %v1889_v35 = vpop.eup %1523  ;;  %v274_v36 = vadd.f32 %v270_v5, %v250_v4  ;;  %v301_v37 = vsel %vm2850_vm2, -0.21103896, %v1649_v29  ;;  %v302_v38 = vsel %vm2849_vm3, -0.21103896, %v1649_v29  ;;  %v292_v40 = vmul.f32 %v280_v16, %v248_v55 }
  0x52   : > { %v293_v41 = vmul.f32 %v281_v17, %v249_v61  ;;  %v294_v42 = vmul.f32 %v282_v23, %v250_v4  ;;  %v303_v44 = vmul.f32 %v299_v31, %v1802_v19  ;;  %v287_v46 = vadd.f32 %v283_v24, %v263_v7 }
  0x53   : > { %v288_v47 = vadd.f32 %v284_v25, %v264_v12  ;;  %v289_v48 = vadd.f32 %v285_v28, %v265_v13  ;;  %v304_v49 = vmul.f32 %v300_v34, %v1807_v20  ;;  %v290_v50 = vadd.f32 %v286_v32, %v266_v15 }
  0x54   : > { %v295_v51 = vadd.f32 %v291_v33, %v271_v18  ;;  %v305_v52 = vmul.f32 %v301_v37, %v1816_v26  ;;  %v306_v53 = vmul.f32 %v302_v38, %v1821_v27  ;;  %v307_v54 = vmul.f32 %v303_v44, %v263_v7 }
  0x55   : > { %v308_v45 = vmul.f32 %v304_v49, %v264_v12  ;;  %v1650_v56 = vmov -0.28716215   ;;  %v315_v62 = vmul.f32 %v303_v44, %v271_v18  ;;  %v296_v57 = vadd.f32 %v292_v40, %v272_v21 }
  0x56   : > { %v323_v55 = vsel %vm2848_vm0, -0.28708133, %v1650_v56  ;;  %v324_v59 = vsel %vm2851_vm1, -0.28708133, %v1650_v56  ;;  %v309_v60 = vmul.f32 %v305_v52, %v265_v13  ;;  %v310_v61 = vmul.f32 %v306_v53, %v266_v15 }
  0x57   : > { %v325_v63 = vsel %vm2850_vm2, -0.28708133, %v1650_v56  ;;  %v297_v0 = vadd.f32 %v293_v41, %v273_v22  ;;  %v316_v1 = vmul.f32 %v304_v49, %v272_v21  ;;  %v326_v2 = vsel %vm2849_vm3, -0.28708133, %v1650_v56 }
  0x58   : > { %v298_v3 = vadd.f32 %v294_v42, %v274_v36  ;;  %v317_v58 = vmul.f32 %v305_v52, %v273_v22  ;;  %v318_v4 = vmul.f32 %v306_v53, %v274_v36  ;;  %v327_v5 = vmul.f32 %v323_v55, %v1802_v19 }
  0x59   : > { %v311_v6 = vadd.f32 %v307_v54, %v287_v46  ;;  %v312_v7 = vadd.f32 %v308_v45, %v288_v47  ;;  %v328_v12 = vmul.f32 %v324_v59, %v1807_v20  ;;  %v329_v13 = vmul.f32 %v325_v63, %v1816_v26 }
  0x5a   : > { %v313_v14 = vadd.f32 %v309_v60, %v289_v48  ;;  %v314_v15 = vadd.f32 %v310_v61, %v290_v50  ;;  %v319_v16 = vadd.f32 %v315_v62, %v295_v51  ;;  %v330_v17 = vmul.f32 %v326_v2, %v1821_v27 }
  0x5b   : > { %v320_v18 = vadd.f32 %v316_v1, %v296_v57  ;;  %v331_v21 = vmul.f32 %v327_v5, %v287_v46  ;;  %v332_v23 = vmul.f32 %v328_v12, %v288_v47  ;;  %v333_v24 = vmul.f32 %v329_v13, %v289_v48 }
  0x5c   : > { %v321_v25 = vadd.f32 %v317_v58, %v297_v0  ;;  %v339_v22 = vmul.f32 %v327_v5, %v295_v51  ;;  %v1651_v28 = vmov -0.21879022   ;;  %v334_v32 = vmul.f32 %v330_v17, %v290_v50 }
  0x5d   : > { %v347_v29 = vsel %vm2848_vm0, -0.22031824, %v1651_v28  ;;  %v348_v31 = vsel %vm2851_vm1, -0.22031824, %v1651_v28  ;;  %v340_v33 = vmul.f32 %v328_v12, %v296_v57  ;;  %v341_v34 = vmul.f32 %v329_v13, %v297_v0 }
  0x5e   : > { %v349_v36 = vsel %vm2850_vm2, -0.22031824, %v1651_v28  ;;  %v1918_v37 = vmul.f32 1.442695, %v1854_v30  ;;  %v322_v38 = vadd.f32 %v318_v4, %v298_v3  ;;  %v342_v40 = vmul.f32 %v330_v17, %v298_v3 }
  0x5f   : > { %v350_v41 = vsel %vm2849_vm3, -0.22031824, %v1651_v28  ;;  %v335_v42 = vadd.f32 %v331_v21, %v311_v6  ;;  %v336_v44 = vadd.f32 %v332_v23, %v312_v7  ;;  %v337_v46 = vadd.f32 %v333_v24, %v313_v14 }
  0x60   : > { %v351_v47 = vmul.f32 %v347_v29, %v1802_v19  ;;  %v343_v48 = vadd.f32 %v339_v22, %v319_v16  ;;  %v352_v49 = vmul.f32 %v348_v31, %v1807_v20  ;;  %v353_v50 = vmul.f32 %v349_v36, %v1816_v26 }
  0x61   : > { %v338_v51 = vadd.f32 %v334_v32, %v314_v15  ;;  %v344_v52 = vadd.f32 %v340_v33, %v320_v18  ;;  %v345_v53 = vadd.f32 %v341_v34, %v321_v25  ;;  %v354_v30 = vmul.f32 %v350_v41, %v1821_v27 }
  0x62   : > { %v355_v54 = vmul.f32 %v351_v47, %v311_v6  ;;  %v356_v45 = vmul.f32 %v352_v49, %v312_v7  ;;  %v357_v56 = vmul.f32 %v353_v50, %v313_v14  ;;  %v1652_v55 = vmov -0.2786221  }
  0x63   : > { %v371_v59 = vsel %vm2848_vm0, -0.27858528, %v1652_v55  ;;  %v358_v60 = vmul.f32 %v354_v30, %v314_v15  ;;  %v363_v61 = vmul.f32 %v351_v47, %v319_v16  ;;  %v372_v62 = vsel %vm2851_vm1, -0.27858528, %v1652_v55 }
  0x64   : > { %v346_v63 = vadd.f32 %v342_v40, %v322_v38  ;;  %v373_v57 = vsel %vm2850_vm2, -0.27858528, %v1652_v55  ;;  %v374_v0 = vsel %vm2849_vm3, -0.27858528, %v1652_v55  ;;  %v364_v1 = vmul.f32 %v352_v49, %v320_v18 }
  0x65   : > { %v365_v2 = vmul.f32 %v353_v50, %v321_v25  ;;  %v366_v3 = vmul.f32 %v354_v30, %v322_v38  ;;  %v375_v58 = vmul.f32 %v371_v59, %v1802_v19  ;;  %v359_v4 = vadd.f32 %v355_v54, %v335_v42 }
  0x66   : > { %v360_v5 = vadd.f32 %v356_v45, %v336_v44  ;;  %v361_v6 = vadd.f32 %v357_v56, %v337_v46  ;;  %v376_v7 = vmul.f32 %v372_v62, %v1807_v20  ;;  %v362_v12 = vadd.f32 %v358_v60, %v338_v51 }
  0x67   : > { %v367_v13 = vadd.f32 %v363_v61, %v343_v48  ;;  %v377_v14 = vmul.f32 %v373_v57, %v1816_v26  ;;  %v378_v15 = vmul.f32 %v374_v0, %v1821_v27  ;;  %v379_v16 = vmul.f32 %v375_v58, %v335_v42 }
  0x68   : > { %v380_v17 = vmul.f32 %v376_v7, %v336_v44  ;;  %v1653_v21 = vmov -0.22504091   ;;  %v387_v22 = vmul.f32 %v375_v58, %v343_v48  ;;  %v368_v29 = vadd.f32 %v364_v1, %v344_v52 }
  0x69   : > { %v395_v18 = vsel %vm2848_vm0, -0.22602202, %v1653_v21  ;;  %v396_v23 = vsel %vm2851_vm1, -0.22602202, %v1653_v21  ;;  %v381_v24 = vmul.f32 %v377_v14, %v337_v46  ;;  %v382_v25 = vmul.f32 %v378_v15, %v338_v51 }
  0x6a   : > { %v397_v28 = vsel %vm2850_vm2, -0.22602202, %v1653_v21  ;;  %v369_v31 = vadd.f32 %v365_v2, %v345_v53  ;;  %v388_v32 = vmul.f32 %v376_v7, %v344_v52  ;;  %v398_v33 = vsel %vm2849_vm3, -0.22602202, %v1653_v21 }
  0x6b   : > { %v370_v34 = vadd.f32 %v366_v3, %v346_v63  ;;  %v389_v36 = vmul.f32 %v377_v14, %v345_v53  ;;  %v390_v38 = vmul.f32 %v378_v15, %v346_v63  ;;  %v399_v40 = vmul.f32 %v395_v18, %v1802_v19 }
  0x6c   : > { %v383_v41 = vadd.f32 %v379_v16, %v359_v4  ;;  %v384_v42 = vadd.f32 %v380_v17, %v360_v5  ;;  %v400_v44 = vmul.f32 %v396_v23, %v1807_v20  ;;  %v401_v46 = vmul.f32 %v397_v28, %v1816_v26 }
  0x6d   : > { %v385_v47 = vadd.f32 %v381_v24, %v361_v6  ;;  %v386_v48 = vadd.f32 %v382_v25, %v362_v12  ;;  %v391_v49 = vadd.f32 %v387_v22, %v367_v13  ;;  %v402_v50 = vmul.f32 %v398_v33, %v1821_v27 }
  0x6e   : > { %v392_v51 = vadd.f32 %v388_v32, %v368_v29  ;;  %v403_v52 = vmul.f32 %v399_v40, %v359_v4  ;;  %v404_v30 = vmul.f32 %v400_v44, %v360_v5  ;;  %v405_v54 = vmul.f32 %v401_v46, %v361_v6 }
  0x6f   : > { %v393_v45 = vadd.f32 %v389_v36, %v369_v31  ;;  %v411_v53 = vmul.f32 %v399_v40, %v367_v13  ;;  %v1654_v56 = vmov -0.27327934   ;;  %v406_v60 = vmul.f32 %v402_v50, %v362_v12 }
  0x70   : > { %v419_v55 = vsel %vm2848_vm0, -0.2732596, %v1654_v56  ;;  %v420_v59 = vsel %vm2851_vm1, -0.2732596, %v1654_v56  ;;  %v412_v61 = vmul.f32 %v400_v44, %v368_v29  ;;  %v413_v62 = vmul.f32 %v401_v46, %v369_v31 }
  0x71   : > { %v421_v63 = vsel %vm2850_vm2, -0.2732596, %v1654_v56  ;;  %1525 = vpow2.f32 %v1867_v43  ;;  %v394_v57 = vadd.f32 %v390_v38, %v370_v34  ;;  %v414_v0 = vmul.f32 %v402_v50, %v370_v34 }
  0x72   : > { %v422_v1 = vsel %vm2849_vm3, -0.2732596, %v1654_v56  ;;  %v407_v2 = vadd.f32 %v403_v52, %v383_v41  ;;  %v408_v3 = vadd.f32 %v404_v30, %v384_v42  ;;  %v409_v58 = vadd.f32 %v405_v54, %v385_v47 }
  0x73   : > { %v423_v4 = vmul.f32 %v419_v55, %v1802_v19  ;;  %v415_v5 = vadd.f32 %v411_v53, %v391_v49  ;;  %v424_v6 = vmul.f32 %v420_v59, %v1807_v20  ;;  %v425_v7 = vmul.f32 %v421_v63, %v1816_v26 }
  0x74   : > { %v410_v12 = vadd.f32 %v406_v60, %v386_v48  ;;  %v416_v13 = vadd.f32 %v412_v61, %v392_v51  ;;  %v417_v14 = vadd.f32 %v413_v62, %v393_v45  ;;  %v426_v43 = vmul.f32 %v422_v1, %v1821_v27 }
  0x75   : > { %v427_v15 = vmul.f32 %v423_v4, %v383_v41  ;;  %v428_v16 = vmul.f32 %v424_v6, %v384_v42  ;;  %v429_v17 = vmul.f32 %v425_v7, %v385_v47  ;;  %v1655_v21 = vmov -0.22920203  }
  0x76   : > { %v443_v18 = vsel %vm2848_vm0, -0.22988506, %v1655_v21  ;;  %v430_v23 = vmul.f32 %v426_v43, %v386_v48  ;;  %v435_v24 = vmul.f32 %v423_v4, %v391_v49  ;;  %v444_v25 = vsel %vm2851_vm1, -0.22988506, %v1655_v21 }
  0x77   : > { %v1967_v22 = vpop.eup %1525  ;;  %v418_v28 = vadd.f32 %v414_v0, %v394_v57  ;;  %v445_v29 = vsel %vm2850_vm2, -0.22988506, %v1655_v21  ;;  %v446_v31 = vsel %vm2849_vm3, -0.22988506, %v1655_v21  ;;  %v436_v32 = vmul.f32 %v424_v6, %v392_v51 }
  0x78   : > { %v437_v33 = vmul.f32 %v425_v7, %v393_v45  ;;  %v438_v34 = vmul.f32 %v426_v43, %v394_v57  ;;  %v447_v36 = vmul.f32 %v443_v18, %v1802_v19  ;;  %v431_v38 = vadd.f32 %v427_v15, %v407_v2 }
  0x79   : > { %v432_v40 = vadd.f32 %v428_v16, %v408_v3  ;;  %v433_v41 = vadd.f32 %v429_v17, %v409_v58  ;;  %v448_v42 = vmul.f32 %v444_v25, %v1807_v20  ;;  %v434_v44 = vadd.f32 %v430_v23, %v410_v12 }
  0x7a   : > { %v439_v46 = vadd.f32 %v435_v24, %v415_v5  ;;  %v449_v47 = vmul.f32 %v445_v29, %v1816_v26  ;;  %v450_v48 = vmul.f32 %v446_v31, %v1821_v27  ;;  %v451_v49 = vmul.f32 %v447_v36, %v407_v2 }
  0x7b   : > { %v452_v50 = vmul.f32 %v448_v42, %v408_v3  ;;  %v1656_v52 = vmov -0.26961964   ;;  %v459_v53 = vmul.f32 %v447_v36, %v415_v5  ;;  %v440_v55 = vadd.f32 %v436_v32, %v416_v13 }
  0x7c   : > { %v467_v51 = vsel %vm2848_vm0, -0.26960784, %v1656_v52  ;;  %v468_v30 = vsel %vm2851_vm1, -0.26960784, %v1656_v52  ;;  %v453_v54 = vmul.f32 %v449_v47, %v409_v58  ;;  %v454_v45 = vmul.f32 %v450_v48, %v410_v12 }
  0x7d   : > { %v469_v56 = vsel %vm2850_vm2, -0.26960784, %v1656_v52  ;;  %v441_v59 = vadd.f32 %v437_v33, %v417_v14  ;;  %v460_v60 = vmul.f32 %v448_v42, %v416_v13  ;;  %v470_v61 = vsel %vm2849_vm3, -0.26960784, %v1656_v52 }
  0x7e   : > { %v442_v62 = vadd.f32 %v438_v34, %v418_v28  ;;  %v461_v63 = vmul.f32 %v449_v47, %v417_v14  ;;  %v462_v57 = vmul.f32 %v450_v48, %v418_v28  ;;  %v471_v0 = vmul.f32 %v467_v51, %v1802_v19 }
  0x7f   : > { %v455_v1 = vadd.f32 %v451_v49, %v431_v38  ;;  %v456_v2 = vadd.f32 %v452_v50, %v432_v40  ;;  %v472_v3 = vmul.f32 %v468_v30, %v1807_v20  ;;  %v473_v58 = vmul.f32 %v469_v56, %v1816_v26 }
  0x80   : > { %v457_v4 = vadd.f32 %v453_v54, %v433_v41  ;;  %v458_v5 = vadd.f32 %v454_v45, %v434_v44  ;;  %v463_v6 = vadd.f32 %v459_v53, %v439_v46  ;;  %v474_v7 = vmul.f32 %v470_v61, %v1821_v27 }
  0x81   : > { %v464_v12 = vadd.f32 %v460_v60, %v440_v55  ;;  %v475_v13 = vmul.f32 %v471_v0, %v431_v38  ;;  %v476_v43 = vmul.f32 %v472_v3, %v432_v40  ;;  %v477_v15 = vmul.f32 %v473_v58, %v433_v41 }
  0x82   : > { %v465_v16 = vadd.f32 %v461_v63, %v441_v59  ;;  %v483_v14 = vmul.f32 %v471_v0, %v439_v46  ;;  %v1657_v17 = vmov -0.23217247   ;;  %v478_v23 = vmul.f32 %v474_v7, %v434_v44 }
  0x83   : > { %v491_v21 = vsel %vm2848_vm0, -0.23267527, %v1657_v17  ;;  %v492_v18 = vsel %vm2851_vm1, -0.23267527, %v1657_v17  ;;  %v484_v24 = vmul.f32 %v472_v3, %v440_v55  ;;  %v485_v25 = vmul.f32 %v473_v58, %v441_v59 }
  0x84   : > { %v493_v28 = vsel %vm2850_vm2, -0.23267527, %v1657_v17  ;;  %1527 = vpow2.f32 %v1918_v37  ;;  %v466_v29 = vadd.f32 %v462_v57, %v442_v62  ;;  %v486_v31 = vmul.f32 %v474_v7, %v442_v62 }
  0x85   : > { %v494_v32 = vsel %vm2849_vm3, -0.23267527, %v1657_v17  ;;  %v479_v33 = vadd.f32 %v475_v13, %v455_v1  ;;  %v480_v34 = vadd.f32 %v476_v43, %v456_v2  ;;  %v481_v36 = vadd.f32 %v477_v15, %v457_v4 }
  0x86   : > { %v495_v38 = vmul.f32 %v491_v21, %v1802_v19  ;;  %v487_v40 = vadd.f32 %v483_v14, %v463_v6  ;;  %v496_v41 = vmul.f32 %v492_v18, %v1807_v20  ;;  %v497_v42 = vmul.f32 %v493_v28, %v1816_v26 }
  0x87   : > { %v482_v44 = vadd.f32 %v478_v23, %v458_v5  ;;  %v488_v46 = vadd.f32 %v484_v24, %v464_v12  ;;  %v489_v47 = vadd.f32 %v485_v25, %v465_v16  ;;  %v498_v37 = vmul.f32 %v494_v32, %v1821_v27 }
  0x88   : > { %v499_v48 = vmul.f32 %v495_v38, %v455_v1  ;;  %v500_v49 = vmul.f32 %v496_v41, %v456_v2  ;;  %v501_v50 = vmul.f32 %v497_v42, %v457_v4  ;;  %v1658_v52 = vmov -0.26695526  }
  0x89   : > { %v515_v51 = vsel %vm2848_vm0, -0.26694766, %v1658_v52  ;;  %v490_v30 = vadd.f32 %v486_v31, %v466_v29  ;;  %v507_v54 = vmul.f32 %v495_v38, %v463_v6  ;;  %v516_v45 = vsel %vm2851_vm1, -0.26694766, %v1658_v52 }
  0x8a   : > { %v2006_v53 = vpop.eup %1527  ;;  %v502_v56 = vmul.f32 %v498_v37, %v458_v5  ;;  %v508_v55 = vmul.f32 %v496_v41, %v464_v12  ;;  %v517_v59 = vsel %vm2850_vm2, -0.26694766, %v1658_v52  ;;  %v518_v60 = vsel %vm2849_vm3, -0.26694766, %v1658_v52 }
  0x8b   : > { %v509_v61 = vmul.f32 %v497_v42, %v465_v16  ;;  %v510_v62 = vmul.f32 %v498_v37, %v466_v29  ;;  %v519_v63 = vmul.f32 %v515_v51, %v1802_v19  ;;  %v503_v57 = vadd.f32 %v499_v48, %v479_v33 }
  0x8c   : > { %v504_v0 = vadd.f32 %v500_v49, %v480_v34  ;;  %v505_v1 = vadd.f32 %v501_v50, %v481_v36  ;;  %v520_v2 = vmul.f32 %v516_v45, %v1807_v20  ;;  %v511_v3 = vadd.f32 %v507_v54, %v487_v40 }
  0x8d   : > { %v521_v58 = vmul.f32 %v517_v59, %v1816_v26  ;;  %v522_v4 = vmul.f32 %v518_v60, %v1821_v27  ;;  %v1659_v5 = vmov -0.23439975   ;;  %v506_v7 = vadd.f32 %v502_v56, %v482_v44 }
  0x8e   : > { %v539_v6 = vsel %vm2848_vm0, -0.23478529, %v1659_v5  ;;  %v512_v12 = vadd.f32 %v508_v55, %v488_v46  ;;  %v523_v13 = vmul.f32 %v519_v63, %v479_v33  ;;  %v524_v43 = vmul.f32 %v520_v2, %v480_v34 }
  0x8f   : > { %v525_v15 = vmul.f32 %v521_v58, %v481_v36  ;;  %v531_v16 = vmul.f32 %v519_v63, %v487_v40  ;;  %v540_v14 = vsel %vm2851_vm1, -0.23478529, %v1659_v5  ;;  %v541_v17 = vsel %vm2850_vm2, -0.23478529, %v1659_v5 }
  0x90   : > { %v513_v21 = vadd.f32 %v509_v61, %v489_v47  ;;  %v526_v18 = vmul.f32 %v522_v4, %v482_v44  ;;  %v542_v23 = vsel %vm2849_vm3, -0.23478529, %v1659_v5  ;;  %v543_v24 = vmul.f32 %v539_v6, %v1802_v19 }
  0x91   : > { %v514_v25 = vadd.f32 %v510_v62, %v490_v30  ;;  %v532_v28 = vmul.f32 %v520_v2, %v488_v46  ;;  %v533_v29 = vmul.f32 %v521_v58, %v489_v47  ;;  %v534_v31 = vmul.f32 %v522_v4, %v490_v30 }
  0x92   : > { %v527_v32 = vadd.f32 %v523_v13, %v503_v57  ;;  %v528_v33 = vadd.f32 %v524_v43, %v504_v0  ;;  %v544_v34 = vmul.f32 %v540_v14, %v1807_v20  ;;  %v545_v36 = vmul.f32 %v541_v17, %v1816_v26 }
  0x93   : > { %v529_v38 = vadd.f32 %v525_v15, %v505_v1  ;;  %v535_v40 = vadd.f32 %v531_v16, %v511_v3  ;;  %v546_v41 = vmul.f32 %v542_v23, %v1821_v27  ;;  %v547_v42 = vmul.f32 %v543_v24, %v503_v57 }
  0x94   : > { %v530_v44 = vadd.f32 %v526_v18, %v506_v7  ;;  %v548_v37 = vmul.f32 %v544_v34, %v504_v0  ;;  %v549_v48 = vmul.f32 %v545_v36, %v505_v1  ;;  %v555_v49 = vmul.f32 %v543_v24, %v511_v3 }
  0x95   : > { %v536_v50 = vadd.f32 %v532_v28, %v512_v12  ;;  %v537_v52 = vadd.f32 %v533_v29, %v513_v21  ;;  %v550_v46 = vmul.f32 %v546_v41, %v506_v7  ;;  %v1660_v47 = vmov -0.26492852  }
  0x96   : > { %v563_v51 = vsel %vm2848_vm0, -0.26492333, %v1660_v47  ;;  %v556_v30 = vmul.f32 %v544_v34, %v512_v12  ;;  %v557_v54 = vmul.f32 %v545_v36, %v513_v21  ;;  %v564_v45 = vsel %vm2851_vm1, -0.26492333, %v1660_v47 }
  0x97   : > { %v565_v56 = vsel %vm2850_vm2, -0.26492333, %v1660_v47  ;;  %v538_v55 = vadd.f32 %v534_v31, %v514_v25  ;;  %v551_v59 = vadd.f32 %v547_v42, %v527_v32  ;;  %v558_v60 = vmul.f32 %v546_v41, %v514_v25 }
  0x98   : > { %v566_v61 = vsel %vm2849_vm3, -0.26492333, %v1660_v47  ;;  %v552_v62 = vadd.f32 %v548_v37, %v528_v33  ;;  %v553_v63 = vadd.f32 %v549_v48, %v529_v38  ;;  %v559_v57 = vadd.f32 %v555_v49, %v535_v40 }
  0x99   : > { %v567_v0 = vmul.f32 %v563_v51, %v1802_v19  ;;  %v554_v1 = vadd.f32 %v550_v46, %v530_v44  ;;  %v568_v2 = vmul.f32 %v564_v45, %v1807_v20  ;;  %v569_v3 = vmul.f32 %v565_v56, %v1816_v26 }
  0x9a   : > { %v560_v58 = vadd.f32 %v556_v30, %v536_v50  ;;  %v561_v4 = vadd.f32 %v557_v54, %v537_v52  ;;  %v570_v5 = vmul.f32 %v566_v61, %v1821_v27  ;;  %v562_v7 = vadd.f32 %v558_v60, %v538_v55 }
  0x9b   : > { %v571_v6 = vmul.f32 %v567_v0, %v527_v32  ;;  %v572_v12 = vmul.f32 %v568_v2, %v528_v33  ;;  %v573_v13 = vmul.f32 %v569_v3, %v529_v38  ;;  %v1661_v43 = vmov -0.23613194  }
  0x9c   : > { %v587_v15 = vsel %vm2848_vm0, -0.23643695, %v1661_v43  ;;  %v574_v16 = vmul.f32 %v570_v5, %v530_v44  ;;  %v579_v14 = vmul.f32 %v567_v0, %v535_v40  ;;  %v588_v17 = vsel %vm2851_vm1, -0.23643695, %v1661_v43 }
  0x9d   : > { %v589_v21 = vsel %vm2850_vm2, -0.23643695, %v1661_v43  ;;  %v580_v18 = vmul.f32 %v568_v2, %v536_v50  ;;  %v590_v23 = vsel %vm2849_vm3, -0.23643695, %v1661_v43  ;;  %v575_v24 = vadd.f32 %v571_v6, %v551_v59 }
  0x9e   : > { %v581_v25 = vmul.f32 %v569_v3, %v537_v52  ;;  %v582_v28 = vmul.f32 %v570_v5, %v538_v55  ;;  %v591_v29 = vmul.f32 %v587_v15, %v1802_v19  ;;  %v576_v31 = vadd.f32 %v572_v12, %v552_v62 }
  0x9f   : > { %v577_v32 = vadd.f32 %v573_v13, %v553_v63  ;;  %v592_v33 = vmul.f32 %v588_v17, %v1807_v20  ;;  %v593_v34 = vmul.f32 %v589_v21, %v1816_v26  ;;  %v578_v36 = vadd.f32 %v574_v16, %v554_v1 }
  0xa0   : > { %v583_v38 = vadd.f32 %v579_v14, %v559_v57  ;;  %v594_v40 = vmul.f32 %v590_v23, %v1821_v27  ;;  %v1662_v41 = vmov -0.26333484   ;;  %v595_v44 = vmul.f32 %v591_v29, %v551_v59 }
  0xa1   : > { %v611_v42 = vsel %vm2848_vm0, -0.26333115, %v1662_v41  ;;  %v596_v37 = vmul.f32 %v592_v33, %v552_v62  ;;  %v597_v48 = vmul.f32 %v593_v34, %v553_v63  ;;  %v612_v49 = vsel %vm2851_vm1, -0.26333115, %v1662_v41 }
  0xa2   : > { %v584_v50 = vadd.f32 %v580_v18, %v560_v58  ;;  %v598_v52 = vmul.f32 %v594_v40, %v554_v1  ;;  %v603_v46 = vmul.f32 %v591_v29, %v559_v57  ;;  %v613_v47 = vsel %vm2850_vm2, -0.26333115, %v1662_v41 }
  0xa3   : > { %v585_v51 = vadd.f32 %v581_v25, %v561_v4  ;;  %v586_v30 = vadd.f32 %v582_v28, %v562_v7  ;;  %v604_v54 = vmul.f32 %v592_v33, %v560_v58  ;;  %v614_v45 = vsel %vm2849_vm3, -0.26333115, %v1662_v41 }
  0xa4   : > { %v605_v56 = vmul.f32 %v593_v34, %v561_v4  ;;  %v606_v55 = vmul.f32 %v594_v40, %v562_v7  ;;  %v615_v59 = vmul.f32 %v611_v42, %v1802_v19  ;;  %v616_v60 = vmul.f32 %v612_v49, %v1807_v20 }
  0xa5   : > { %v599_v61 = vadd.f32 %v595_v44, %v575_v24  ;;  %v600_v62 = vadd.f32 %v596_v37, %v576_v31  ;;  %v601_v63 = vadd.f32 %v597_v48, %v577_v32  ;;  %v617_v57 = vmul.f32 %v613_v47, %v1816_v26 }
  0xa6   : > { %v602_v0 = vadd.f32 %v598_v52, %v578_v36  ;;  %v607_v1 = vadd.f32 %v603_v46, %v583_v38  ;;  %v618_v2 = vmul.f32 %v614_v45, %v1821_v27  ;;  %v619_v3 = vmul.f32 %v615_v59, %v575_v24 }
  0xa7   : > { %v608_v58 = vadd.f32 %v604_v54, %v584_v50  ;;  %v620_v5 = vmul.f32 %v616_v60, %v576_v31  ;;  %v621_v6 = vmul.f32 %v617_v57, %v577_v32  ;;  %v1663_v12 = vmov -0.23751768  }
  0xa8   : > { %v635_v4 = vsel %vm2848_vm0, -0.23776501, %v1663_v12  ;;  %v622_v7 = vmul.f32 %v618_v2, %v578_v36  ;;  %v627_v13 = vmul.f32 %v615_v59, %v583_v38  ;;  %v628_v43 = vmul.f32 %v616_v60, %v584_v50 }
  0xa9   : > { %v636_v15 = vsel %vm2851_vm1, -0.23776501, %v1663_v12  ;;  %v609_v16 = vadd.f32 %v605_v56, %v585_v51  ;;  %v610_v14 = vadd.f32 %v606_v55, %v586_v30  ;;  %v629_v17 = vmul.f32 %v617_v57, %v585_v51 }
  0xaa   : > { %v637_v21 = vsel %vm2850_vm2, -0.23776501, %v1663_v12  ;;  %v623_v18 = vadd.f32 %v619_v3, %v599_v61  ;;  %v630_v23 = vmul.f32 %v618_v2, %v586_v30  ;;  %v638_v24 = vsel %vm2849_vm3, -0.23776501, %v1663_v12 }
  0xab   : > { %v624_v25 = vadd.f32 %v620_v5, %v600_v62  ;;  %v625_v28 = vadd.f32 %v621_v6, %v601_v63  ;;  %v639_v29 = vmul.f32 %v635_v4, %v1802_v19  ;;  %v640_v31 = vmul.f32 %v636_v15, %v1807_v20 }
  0xac   : > { %v2074_v32 = vadd.f32 %v622_v7, %v602_v0  ;;  %v631_v33 = vadd.f32 %v627_v13, %v607_v1  ;;  %v632_v34 = vadd.f32 %v628_v43, %v608_v58  ;;  %v641_v36 = vmul.f32 %v637_v21, %v1816_v26 }
  0xad   : > { %v633_v38 = vadd.f32 %v629_v17, %v609_v16  ;;  %v642_v40 = vmul.f32 %v638_v24, %v1821_v27  ;;  %v1664_v41 = vmov -0.26204875   ;;  %v634_v37 = vadd.f32 %v630_v23, %v610_v14 }
  0xae   : > { %v659_v42 = vsel %vm2848_vm0, -0.26204604, %v1664_v41  ;;  %v660_v44 = vsel %vm2851_vm1, -0.26204604, %v1664_v41  ;;  %v643_v48 = vmul.f32 %v639_v29, %v599_v61  ;;  %v661_v49 = vsel %vm2850_vm2, -0.26204604, %v1664_v41 }
  0xaf   : > { %v644_v50 = vmul.f32 %v640_v31, %v600_v62  ;;  %v651_v52 = vmul.f32 %v639_v29, %v607_v1  ;;  %v652_v46 = vmul.f32 %v640_v31, %v608_v58  ;;  %v662_v47 = vsel %vm2849_vm3, -0.26204604, %v1664_v41 }
  0xb0   : > { %v653_v51 = vmul.f32 %v641_v36, %v609_v16  ;;  %v663_v30 = vmul.f32 %v659_v42, %v1802_v19  ;;  %v664_v54 = vmul.f32 %v660_v44, %v1807_v20  ;;  %v645_v45 = vmul.f32 %v641_v36, %v601_v63 }
  0xb1   : > { %v646_v56 = vmul.f32 %v642_v40, %v602_v0  ;;  %v654_v55 = vmul.f32 %v642_v40, %v610_v14  ;;  %v665_v59 = vmul.f32 %v661_v49, %v1816_v26  ;;  %v666_v60 = vmul.f32 %v662_v47, %v1821_v27 }
  0xb2   : > { %v1665_v61 = vmov -0.23865153   ;;  %v647_v2 = vadd.f32 %v643_v48, %v623_v18  ;;  %v648_v3 = vadd.f32 %v644_v50, %v624_v25  ;;  %v655_v58 = vadd.f32 %v651_v52, %v631_v33 }
  0xb3   : > { %v683_v62 = vsel %vm2848_vm0, -0.2388561, %v1665_v61  ;;  %v684_v57 = vsel %vm2851_vm1, -0.2388561, %v1665_v61  ;;  %v685_v1 = vsel %vm2850_vm2, -0.2388561, %v1665_v61  ;;  %v656_v63 = vadd.f32 %v652_v46, %v632_v34 }
  0xb4   : > { %v657_v0 = vadd.f32 %v653_v51, %v633_v38  ;;  %v675_v5 = vmul.f32 %v663_v30, %v631_v33  ;;  %v676_v6 = vmul.f32 %v664_v54, %v632_v34  ;;  %v686_v12 = vsel %vm2849_vm3, -0.2388561, %v1665_v61 }
  0xb5   : > { %v677_v4 = vmul.f32 %v665_v59, %v633_v38  ;;  %v687_v7 = vmul.f32 %v683_v62, %v1802_v19  ;;  %v688_v13 = vmul.f32 %v684_v57, %v1807_v20  ;;  %v2101_v43 = vmul.f32 %v685_v1, %v1816_v26 }
  0xb6   : > { %v649_v15 = vadd.f32 %v645_v45, %v625_v28  ;;  %v658_v16 = vadd.f32 %v654_v55, %v634_v37  ;;  %v667_v14 = vmul.f32 %v663_v30, %v623_v18  ;;  %v678_v17 = vmul.f32 %v666_v60, %v634_v37 }
  0xb7   : > { %v690_v21 = vmul.f32 %v686_v12, %v1821_v27  ;;  %v1666_v23 = vmov -0.260989   ;;  %v668_v33 = vmul.f32 %v664_v54, %v624_v25  ;;  %v669_v34 = vmul.f32 %v665_v59, %v625_v28 }
  0xb8   : > { %v707_v24 = vsel %vm2848_vm0, -0.26098695, %v1666_v23  ;;  %v708_v29 = vsel %vm2851_vm1, -0.26098695, %v1666_v23  ;;  %v709_v31 = vsel %vm2850_vm2, -0.26098695, %v1666_v23  ;;  %v679_v36 = vadd.f32 %v675_v5, %v655_v58 }
  0xb9   : > { %v680_v38 = vadd.f32 %v676_v6, %v656_v63  ;;  %v681_v40 = vadd.f32 %v677_v4, %v657_v0  ;;  %v699_v41 = vmul.f32 %v687_v7, %v655_v58  ;;  %v700_v18 = vmul.f32 %v688_v13, %v656_v63 }
  0xba   : > { %v701_v42 = vmul.f32 %v2101_v43, %v657_v0  ;;  %v710_v44 = vsel %vm2849_vm3, -0.26098695, %v1666_v23  ;;  %v711_v37 = vmul.f32 %v707_v24, %v1802_v19  ;;  %v712_v48 = vmul.f32 %v708_v29, %v1807_v20 }
  0xbb   : > { %v713_v49 = vmul.f32 %v709_v31, %v1816_v26  ;;  %v650_v50 = vadd.f32 %v646_v56, %v2074_v32  ;;  %v682_v25 = vadd.f32 %v678_v17, %v658_v16  ;;  %v702_v28 = vmul.f32 %v690_v21, %v658_v16 }
  0xbc   : > { %v714_v52 = vmul.f32 %v710_v44, %v1821_v27  ;;  %v670_v46 = vmul.f32 %v666_v60, %v2074_v32  ;;  %v671_v47 = vadd.f32 %v667_v14, %v647_v2  ;;  %v672_v51 = vadd.f32 %v668_v33, %v648_v3 }
  0xbd   : > { %v835_v30 = vlaneseq  ;;  %v673_v54 = vadd.f32 %v669_v34, %v649_v15  ;;  %v703_v45 = vadd.f32 %v699_v41, %v679_v36  ;;  %v704_v55 = vadd.f32 %v700_v18, %v680_v38 }
  0xbe   : > { %v705_v59 = vadd.f32 %v701_v42, %v681_v40  ;;  %v723_v61 = vmul.f32 %v711_v37, %v679_v36  ;;  %v724_v62 = vmul.f32 %v712_v48, %v680_v38  ;;  %v725_v57 = vmul.f32 %v713_v49, %v681_v40 }
  0xbf   : > { %v691_v1 = vmul.f32 %v687_v7, %v647_v2  ;;  %v706_v58 = vadd.f32 %v702_v28, %v682_v25  ;;  %v726_v63 = vmul.f32 %v714_v52, %v682_v25  ;;  %v692_v56 = vmul.f32 %v688_v13, %v648_v3 }
  0xc0   : > { %v1667_v0 = vmov -0.23959647   ;;  %v727_v3 = vadd.f32 %v723_v61, %v703_v45  ;;  %v728_v7 = vadd.f32 %v724_v62, %v704_v55  ;;  %v729_v13 = vadd.f32 %v725_v57, %v705_v59 }
  0xc1   : > { %v731_v5 = vsel %vm2848_vm0, -0.2397685, %v1667_v0  ;;  %v732_v32 = vsel %vm2851_vm1, -0.2397685, %v1667_v0  ;;  %v733_v60 = vsel %vm2850_vm2, -0.2397685, %v1667_v0  ;;  %v730_v14 = vadd.f32 %v726_v63, %v706_v58 }
  0xc2   : > { %v734_v6 = vsel %vm2849_vm3, -0.2397685, %v1667_v0  ;;  %v735_v12 = vmul.f32 %v731_v5, %v1802_v19  ;;  %v736_v2 = vmul.f32 %v732_v32, %v1807_v20  ;;  %v737_v4 = vmul.f32 %v733_v60, %v1816_v26 }
  0xc3   : > { %v738_v16 = vmul.f32 %v734_v6, %v1821_v27  ;;  %v1668_v23 = vmov -0.2601007   ;;  %v674_v38 = vadd.f32 %v670_v46, %v650_v50  ;;  %v693_v40 = vmul.f32 %v2101_v43, %v649_v15 }
  0xc4   : > { %v747_v17 = vmul.f32 %v735_v12, %v703_v45  ;;  %v755_v24 = vsel %vm2848_vm0, -0.26009908, %v1668_v23  ;;  %v756_v29 = vsel %vm2851_vm1, -0.26009908, %v1668_v23  ;;  %v748_v31 = vmul.f32 %v736_v2, %v704_v55 }
  0xc5   : > { %v749_v33 = vmul.f32 %v737_v4, %v705_v59  ;;  %v750_v34 = vmul.f32 %v738_v16, %v706_v58  ;;  %v757_v36 = vsel %vm2850_vm2, -0.26009908, %v1668_v23  ;;  %v694_v41 = vmul.f32 %v690_v21, %v650_v50 }
  0xc6   : > { %v695_v18 = vadd.f32 %v691_v1, %v671_v47  ;;  %v696_v42 = vadd.f32 %v692_v56, %v672_v51  ;;  %v715_v44 = vmul.f32 %v711_v37, %v671_v47  ;;  %v716_v25 = vmul.f32 %v712_v48, %v672_v51 }
  0xc7   : > { %v751_v28 = vadd.f32 %v747_v17, %v727_v3  ;;  %v758_v45 = vsel %vm2849_vm3, -0.26009908, %v1668_v23  ;;  %v759_v61 = vmul.f32 %v755_v24, %v1802_v19  ;;  %v760_v55 = vmul.f32 %v756_v29, %v1807_v20 }
  0xc8   : > { %v761_v59 = vmul.f32 %v757_v36, %v1816_v26  ;;  %v752_v62 = vadd.f32 %v748_v31, %v728_v7  ;;  %v753_v57 = vadd.f32 %v749_v33, %v729_v13  ;;  %v754_v46 = vadd.f32 %v750_v34, %v730_v14 }
  0xc9   : > { %v762_v43 = vmul.f32 %v758_v45, %v1821_v27  ;;  %v697_v15 = vadd.f32 %v693_v40, %v673_v54  ;;  %v698_v21 = vadd.f32 %v694_v41, %v674_v38  ;;  %v717_v50 = vmul.f32 %v713_v49, %v673_v54 }
  0xca   : > { %v771_v37 = vmul.f32 %v759_v61, %v727_v3  ;;  %v718_v48 = vmul.f32 %v714_v52, %v674_v38  ;;  %v772_v47 = vmul.f32 %v760_v55, %v728_v7  ;;  %v773_v51 = vmul.f32 %v761_v59, %v729_v13  ;;  %v2149_v3 = vld [vmem:[%s1769_s25] sm:$0xff] }
  0xcb   : > { %v774_v1 = vmul.f32 %v762_v43, %v730_v14  ;;  %v719_v58 = vadd.f32 %v715_v44, %v695_v18  ;;  %v720_v63 = vadd.f32 %v716_v25, %v696_v42  ;;  %v739_v19 = vmul.f32 %v735_v12, %v695_v18  ;;  %v2153_v14 = vld [vmem:[%s1769_s25 + $0x8] sm:$0xff] }
  0xcc   : > { %v775_v56 = vadd.f32 %v771_v37, %v751_v28  ;;  %v740_v20 = vmul.f32 %v736_v2, %v696_v42  ;;  %v776_v0 = vadd.f32 %v772_v47, %v752_v62  ;;  %v777_v26 = vadd.f32 %v773_v51, %v753_v57 }
  0xcd   : > { %v778_v5 = vadd.f32 %v774_v1, %v754_v46  ;;  %v193_v32 = vmul.f32 1.442695, %v1863_v39  ;;  %v721_v27 = vadd.f32 %v717_v50, %v697_v15  ;;  %v741_v60 = vmul.f32 %v737_v4, %v697_v15 }
  0xce   : > { %1529 = vrcp.f32 %v775_v56  ;;  %v722_v49 = vadd.f32 %v718_v48, %v698_v21  ;;  %v742_v52 = vmul.f32 %v738_v16, %v698_v21  ;;  %v2146_v54 = vshrl.u32 %v835_v30, 7  ;;  %v2206_v48 = vld [vmem:[%s1769_s25 + $0x18] sm:$0xff] }
  0xcf   : > { %1531 = vrcp.f32 %v776_v0  ;;  %v743_v6 = vadd.f32 %v739_v19, %v719_v58  ;;  %v744_v12 = vadd.f32 %v740_v20, %v720_v63  ;;  %v763_v2 = vmul.f32 %v759_v61, %v719_v58  ;;  %v2180_v61 = vld [vmem:[%s1769_s25 + $0x10] sm:$0xff] }
  0xd0   : > { %1533 = vrcp.f32 %v777_v26  ;;  %v838_v7 = vperm.slane %v2149_v3, 0  ;;  %v745_v39 = vadd.f32 %v741_v60, %v721_v27  ;;  %v764_v13 = vmul.f32 %v760_v55, %v720_v63 }
  0xd1   : > { %1535 = vrcp.f32 %v778_v5  ;;  %v765_v4 = vmul.f32 %v761_v59, %v721_v27  ;;  %v839_v16 = vperm.slane %v2153_v14, 0  ;;  %v746_v17 = vadd.f32 %v742_v52, %v722_v49 }
  0xd2   : > { %1537 = vpow2.f32 %v193_v32  ;;  %vm844_vm4 = vcmp.eq.f32.partialorder %v838_v7, %v2149_v3  ;;  %vm848_vm5 = vcmp.gt.s32.totalorder %v2146_v54, 0  ;;  %v766_v24 = vmul.f32 %v762_v43, %v722_v49 }
  0xd3   : > { %vm845_vm6 = vcmp.eq.f32.partialorder %v839_v16, %v2153_v14  ;;  %v2160_v29 = vperm.slane %v2149_v3, 1  ;;  %v767_v33 = vadd.f32 %v763_v2, %v743_v6  ;;  %vm840_vm7 = vcmp.lt.f32.partialorder %v838_v7, %v2149_v3  ;;  %vm2165_vm8 = vmand %vm844_vm4, %vm848_vm5 }
  0xd4   : > { %v1530_v23 = vpop.eup %1529  ;;  %v2170_v38 = vperm.slane %v2153_v14, 1  ;;  %v768_v41 = vadd.f32 %v764_v13, %v744_v12  ;;  %v769_v18 = vadd.f32 %v765_v4, %v745_v39  ;;  %vm841_vm9 = vcmp.lt.f32.partialorder %v839_v16, %v2153_v14  ;;  %vm2175_vm10 = vmand %vm845_vm6, %vm848_vm5 }
  0xd5   : > { %v1532_v31 = vpop.eup %1531  ;;  %v783_v34 = vmul.f32 %v1530_v23, %v775_v56  ;;  %vm842_vm11 = vcmp.lt.f32.partialorder %v838_v7, %v2180_v61  ;;  %vm846_vm12 = vcmp.eq.f32.partialorder %v838_v7, %v2180_v61  ;;  %v770_v55 = vadd.f32 %v766_v24, %v746_v17  ;;  %vm2188_vm13 = vmor %vm840_vm7, %vm2165_vm8 }
  0xd6   : > { %v1534_v40 = vpop.eup %1533  ;;  %v784_v42 = vmul.f32 %v1532_v31, %v776_v0  ;;  %vm868_vm14 = vcmp.eq.f32.partialorder %v2160_v29, %v2149_v3  ;;  %vm2198_vm15 = vmor %vm841_vm9, %vm2175_vm10  ;;  %vm869_vm4 = vcmp.eq.f32.partialorder %v2170_v38, %v2153_v14  ;;  %vm872_vm5 = vcmp.gt.s32.totalorder %v2146_v54, 1 }
  0xd7   : > { %v1536_v25 = vpop.eup %1535  ;;  %v785_v28 = vmul.f32 %v1534_v40, %v777_v26  ;;  %v787_v45 = vsub.f32 2.0, %v783_v34  ;;  %vm843_vm6 = vcmp.lt.f32.partialorder %v839_v16, %v2206_v48  ;;  %vm847_vm7 = vcmp.eq.f32.partialorder %v839_v16, %v2206_v48  ;;  %vm2214_vm8 = vmor %vm842_vm11, %vm846_vm12 }
  0xd8   : > { %v786_v59 = vmul.f32 %v1536_v25, %v778_v5  ;;  %v788_v62 = vsub.f32 2.0, %v784_v42  ;;  %v1538_v46 = vpop.eup %1537  ;;  %v1669_v58 = vmov 2.5   ;;  %vm864_vm9 = vcmp.lt.f32.partialorder %v2160_v29, %v2149_v3  ;;  %vm874_vm10 = vmand %vm868_vm14, %vm872_vm5 }
  0xd9   : > { %v789_v43 = vsub.f32 2.0, %v785_v28  ;;  %v791_v15 = vmul.f32 %v1530_v23, %v787_v45  ;;  %v799_v63 = vsel %vm2848_vm0, 1.6666666, %v1669_v58  ;;  %vm865_vm11 = vcmp.lt.f32.partialorder %v2170_v38, %v2153_v14  ;;  %vm875_vm12 = vmand %vm869_vm4, %vm872_vm5 }
  0xda   : > { %v790_v50 = vsub.f32 2.0, %v786_v59  ;;  %v792_v37 = vmul.f32 %v1532_v31, %v788_v62  ;;  %vm2237_vm0 = vmor %vm843_vm6, %vm847_vm7  ;;  %vm870_vm3 = vcmp.eq.f32.partialorder %v2160_v29, %v2180_v61  ;;  %v800_v5 = vsel %vm2851_vm1, 1.6666666, %v1669_v58 }
  0xdb   : > { %v793_v51 = vmul.f32 %v1534_v40, %v789_v43  ;;  %v795_v1 = vmul.f32 %v791_v15, %v767_v33  ;;  %vm867_vm4 = vcmp.lt.f32.partialorder %v2170_v38, %v2206_v48  ;;  %vm871_vm5 = vcmp.eq.f32.partialorder %v2170_v38, %v2206_v48  ;;  %vm2251_vm2 = vmor %vm864_vm9, %vm874_vm10 }
  0xdc   : > { %v794_v19 = vmul.f32 %v1536_v25, %v790_v50  ;;  %v796_v56 = vmul.f32 %v792_v37, %v768_v41  ;;  %v890_v32 = vperm.slane %v2149_v3, 2  ;;  %vm2871_vm6 = vcmp.lt.f32.partialorder %v1783_v10, 0.53333336  ;;  %vm2260_vm14 = vmor %vm865_vm11, %vm875_vm12 }
  0xdd   : > { %v797_v20 = vmul.f32 %v793_v51, %v769_v18  ;;  %v803_v0 = vmul.f32 %v1889_v35, %v795_v1  ;;  %v801_v27 = vsel %vm2871_vm6, 1.6666666, %v1669_v58  ;;  %vm2872_vm7 = vcmp.lt.f32.partialorder %v1786_v11, 0.53333336 }
  0xde   : > { %v802_v60 = vsel %vm2872_vm7, 1.6666666, %v1669_v58  ;;  %v891_v52 = vperm.slane %v2153_v14, 2  ;;  %v798_v6 = vmul.f32 %v794_v19, %v770_v55  ;;  %v804_v12 = vmul.f32 %v1967_v22, %v796_v56 }
  0xdf   : > { %v1670_v2 = vmov 0   ;;  %vm2875_vm9 = vcmp.lt.f32.partialorder %v2160_v29, %v2180_v61  ;;  %v805_v13 = vmul.f32 %v2006_v53, %v797_v20  ;;  %v807_v4 = vmul.f32 %v803_v0, %v799_v63 }
  0xe0   : > { %v858_v7 = vsel %vm2188_vm13, 1, %v1670_v2  ;;  %v859_v39 = vsel %vm2198_vm15, 1, %v1670_v2  ;;  %vm880_vm10 = vmor %vm2875_vm9, %vm870_vm3  ;;  %v860_v22 = vsel %vm2214_vm8, 1, %v1670_v2  ;;  %v861_v16 = vsel %vm2237_vm0, 1, %v1670_v2 }
  0xe1   : > { %vm881_vm13 = vmor %vm867_vm4, %vm871_vm5  ;;  %v882_v53 = vsel %vm2251_vm2, 1, %v1670_v2  ;;  %vm892_vm3 = vcmp.lt.f32.partialorder %v890_v32, %v2149_v3  ;;  %vm900_vm15 = vcmp.gt.s32.totalorder %v2146_v54, 2  ;;  %v918_v17 = vperm.slane %v2149_v3, 3 }
  0xe2   : > { %v883_v23 = vsel %vm2260_vm14, 1, %v1670_v2  ;;  %v884_v24 = vsel %vm880_vm10, 1, %v1670_v2  ;;  %vm896_vm0 = vcmp.eq.f32.partialorder %v890_v32, %v2149_v3  ;;  %vm897_vm8 = vcmp.eq.f32.partialorder %v891_v52, %v2153_v14 }
  0xe3   : > { %v806_v29 = vmul.f32 %v1538_v46, %v798_v6  ;;  %v2303_v31 = vmul.f32 %v804_v12, %v800_v5  ;;  %v885_v33 = vsel %vm881_vm13, 1, %v1670_v2  ;;  %vm893_vm2 = vcmp.lt.f32.partialorder %v891_v52, %v2153_v14  ;;  %vm902_vm11 = vmand %vm896_vm0, %vm900_vm15 }
  0xe4   : > { %v2309_v34 = vmul.f32 %v805_v13, %v801_v27  ;;  %v811_v36 = vsub.f32 1.0, %v807_v4  ;;  %vm894_vm12 = vcmp.lt.f32.partialorder %v890_v32, %v2180_v61  ;;  %vm898_vm14 = vcmp.eq.f32.partialorder %v890_v32, %v2180_v61  ;;  %vm903_vm4 = vmand %vm897_vm8, %vm900_vm15 }
  0xe5   : > { %vm895_vm5 = vcmp.lt.f32.partialorder %v891_v52, %v2206_v48  ;;  %vm899_vm6 = vcmp.eq.f32.partialorder %v891_v52, %v2206_v48  ;;  %vm906_vm7 = vmor %vm892_vm3, %vm902_vm11  ;;  %v919_v38 = vperm.slane %v2153_v14, 3  ;;  %v2321_v40 = vadd.s32 8, %v2146_v54 }
  0xe6   : > { %v886_v41 = vadd.s32 %v882_v53, %v858_v7  ;;  %v887_v18 = vadd.s32 %v883_v23, %v859_v39  ;;  %v888_v42 = vadd.s32 %v884_v24, %v860_v22  ;;  %vm907_vm9 = vmor %vm893_vm2, %vm903_vm4  ;;  %v2325_v44 = vmul.f32 %v806_v29, %v802_v60 }
  0xe7   : > { %v889_v25 = vadd.s32 %v885_v33, %v861_v16  ;;  %vm908_vm10 = vmor %vm894_vm12, %vm898_vm14  ;;  %v910_v28 = vsel %vm906_vm7, 1, %v1670_v2  ;;  %v911_v45 = vsel %vm907_vm9, 1, %v1670_v2  ;;  %v812_v55 = vsub.f32 1.0, %v2303_v31 }
  0xe8   : > { %v813_v59 = vsub.f32 1.0, %v2309_v34  ;;  %vm2876_vm13 = vcmp.lt.f32.partialorder %v1779_v8, 0.53333336  ;;  %vm909_vm3 = vmor %vm895_vm5, %vm899_vm6  ;;  %vm920_vm15 = vcmp.lt.f32.partialorder %v918_v17, %v2149_v3  ;;  %v912_v57 = vsel %vm908_vm10, 1, %v1670_v2 }
  0xe9   : > { %v2333_v62 = vsel %vm2876_vm13, %v807_v4, %v811_v36  ;;  %v913_v46 = vsel %vm909_vm3, 1, %v1670_v2  ;;  %vm924_vm0 = vcmp.eq.f32.partialorder %v918_v17, %v2149_v3  ;;  %vm925_vm8 = vcmp.eq.f32.partialorder %v919_v38, %v2153_v14 }
  0xea   : > { %v914_v43 = vadd.s32 %v910_v28, %v886_v41  ;;  %v915_v15 = vadd.s32 %v911_v45, %v887_v18  ;;  %vm921_vm2 = vcmp.lt.f32.partialorder %v919_v38, %v2153_v14  ;;  %vm928_vm11 = vcmp.gt.s32.totalorder %v2146_v54, 3 }
  0xeb   : > { %vm922_vm12 = vcmp.lt.f32.partialorder %v918_v17, %v2180_v61  ;;  %vm923_vm14 = vcmp.lt.f32.partialorder %v919_v38, %v2206_v48  ;;  %vm930_vm4 = vmand %vm924_vm0, %vm928_vm11  ;;  %v946_v8 = vperm.slane %v2149_v3, 4  ;;  %v947_v21 = vperm.slane %v2153_v14, 4 }
  0xec   : > { %v916_v50 = vadd.s32 %v912_v57, %v888_v42  ;;  %v917_v37 = vadd.s32 %v913_v46, %v889_v25  ;;  %vm926_vm5 = vcmp.eq.f32.partialorder %v918_v17, %v2180_v61  ;;  %vm927_vm6 = vcmp.eq.f32.partialorder %v919_v38, %v2206_v48  ;;  %vm931_vm7 = vmand %vm925_vm8, %vm928_vm11 }
  0xed   : > { %vm934_vm9 = vmor %vm920_vm15, %vm930_vm4  ;;  %vm956_vm10 = vcmp.gt.s32.totalorder %v2146_v54, 4  ;;  %v2356_v47 = vperm.slane %v2149_v3, 5  ;;  %v2359_v51 = vperm.slane %v2153_v14, 5  ;;  %vm952_vm0 = vcmp.eq.f32.partialorder %v946_v8, %v2149_v3 }
  0xee   : > { %vm935_vm3 = vmor %vm921_vm2, %vm931_vm7  ;;  %v938_v1 = vsel %vm934_vm9, 1, %v1670_v2  ;;  %v2367_v58 = vperm.slane %v2149_v3, 6  ;;  %v2370_v63 = vperm.slane %v2153_v14, 6  ;;  %vm948_vm8 = vcmp.lt.f32.partialorder %v946_v8, %v2149_v3 }
  0xef   : > { %vm936_vm15 = vmor %vm922_vm12, %vm926_vm5  ;;  %v939_v19 = vsel %vm935_vm3, 1, %v1670_v2  ;;  %vm949_vm11 = vcmp.lt.f32.partialorder %v947_v21, %v2153_v14  ;;  %vm953_vm2 = vcmp.eq.f32.partialorder %v947_v21, %v2153_v14  ;;  %vm950_vm7 = vcmp.lt.f32.partialorder %v946_v8, %v2180_v61 }
  0xf0   : > { %vm937_vm4 = vmor %vm923_vm14, %vm927_vm6  ;;  %v940_v56 = vsel %vm936_vm15, 1, %v1670_v2  ;;  %vm951_vm9 = vcmp.lt.f32.partialorder %v947_v21, %v2206_v48  ;;  %vm954_vm12 = vcmp.eq.f32.partialorder %v946_v8, %v2180_v61  ;;  %v942_v0 = vadd.s32 %v938_v1, %v914_v43 }
  0xf1   : > { %v941_v20 = vsel %vm937_vm4, 1, %v1670_v2  ;;  %vm955_vm5 = vcmp.eq.f32.partialorder %v947_v21, %v2206_v48  ;;  %vm958_vm3 = vmand %vm952_vm0, %vm956_vm10  ;;  %v943_v26 = vadd.s32 %v939_v19, %v915_v15  ;;  %v944_v5 = vadd.s32 %v940_v56, %v916_v50 }
  0xf2   : > { %vm959_vm6 = vmand %vm953_vm2, %vm956_vm10  ;;  %vm977_vm15 = vcmp.lt.f32.partialorder %v2359_v51, %v2153_v14  ;;  %vm978_vm4 = vcmp.lt.f32.partialorder %v2356_v47, %v2180_v61  ;;  %v945_v35 = vadd.s32 %v941_v20, %v917_v37  ;;  %vm980_vm14 = vcmp.eq.f32.partialorder %v2356_v47, %v2149_v3 }
  0xf3   : > { %vm962_vm1 = vmor %vm948_vm8, %vm958_vm3  ;;  %vm981_vm13 = vcmp.eq.f32.partialorder %v2359_v51, %v2153_v14  ;;  %vm982_vm2 = vcmp.eq.f32.partialorder %v2356_v47, %v2180_v61  ;;  %vm983_vm8 = vcmp.eq.f32.partialorder %v2359_v51, %v2206_v48  ;;  %v2438_v49 = vperm.slane %v2149_v3, 7 }
  0xf4   : > { %vm963_vm10 = vmor %vm949_vm11, %vm959_vm6  ;;  %v966_v32 = vsel %vm962_vm1, 1, %v1670_v2  ;;  %vm1008_vm1 = vcmp.eq.f32.partialorder %v2367_v58, %v2149_v3  ;;  %v2441_v52 = vperm.slane %v2153_v14, 7  ;;  %v2464_v39 = vperm.slane %v2180_v61, 0 }
  0xf5   : > { %vm964_vm0 = vmor %vm950_vm7, %vm954_vm12  ;;  %v967_v27 = vsel %vm963_vm10, 1, %v1670_v2  ;;  %v970_v12 = vadd.s32 %v966_v32, %v942_v0  ;;  %vm2877_vm10 = vcmp.gt.s32.totalorder %v2146_v54, 5  ;;  %vm1012_vm7 = vcmp.gt.s32.totalorder %v2146_v54, 6 }
  0xf6   : > { %vm965_vm3 = vmor %vm951_vm9, %vm955_vm5  ;;  %v968_v60 = vsel %vm964_vm0, 1, %v1670_v2  ;;  %v971_v7 = vadd.s32 %v967_v27, %v943_v26  ;;  %vm1032_vm11 = vcmp.lt.f32.partialorder %v2438_v49, %v2149_v3  ;;  %vm1034_vm0 = vcmp.lt.f32.partialorder %v2438_v49, %v2180_v61 }
  0xf7   : > { %v969_v6 = vsel %vm965_vm3, 1, %v1670_v2  ;;  %vm986_vm9 = vmand %vm980_vm14, %vm2877_vm10  ;;  %vm1033_vm14 = vcmp.lt.f32.partialorder %v2441_v52, %v2153_v14  ;;  %v972_v13 = vadd.s32 %v968_v60, %v944_v5  ;;  %v2472_v22 = vperm.slane %v2206_v48, 0 }
  0xf8   : > { %vm2878_vm12 = vmmov %vm2877_vm10  ;;  %v973_v4 = vadd.s32 %v969_v6, %v945_v35  ;;  %vm2879_vm10 = vcmp.lt.f32.partialorder %v2356_v47, %v2149_v3  ;;  %vm1038_vm6 = vcmp.eq.f32.partialorder %v2438_v49, %v2180_v61  ;;  %v1050_v17 = vsel %vm1032_vm11, 1, %v1670_v2 }
  0xf9   : > { %vm987_vm3 = vmand %vm981_vm13, %vm2878_vm12  ;;  %vm1035_vm12 = vcmp.lt.f32.partialorder %v2441_v52, %v2206_v48  ;;  %v1051_v23 = vsel %vm1033_vm14, 1, %v1670_v2  ;;  %vm1066_vm14 = vcmp.eq.f32.partialorder %v2464_v39, %v2180_v61  ;;  %v2524_v41 = vperm.slane %v2180_v61, 1 }
  0xfa   : > { %vm990_vm5 = vmor %vm2879_vm10, %vm986_vm9  ;;  %vm1039_vm9 = vcmp.eq.f32.partialorder %v2441_v52, %v2206_v48  ;;  %v2527_v18 = vperm.slane %v2206_v48, 1  ;;  %v2558_v46 = vperm.slane %v2180_v61, 2  ;;  %v2561_v43 = vperm.slane %v2206_v48, 2 }
  0xfb   : > { %vm991_vm13 = vmor %vm977_vm15, %vm987_vm3  ;;  %v994_v16 = vsel %vm990_vm5, 1, %v1670_v2  ;;  %vm1060_vm15 = vcmp.lt.f32.partialorder %v2464_v39, %v2149_v3  ;;  %vm2880_vm5 = vcmp.lt.f32.partialorder %v2359_v51, %v2206_v48  ;;  %v1142_v49 = vperm.slane %v2180_v61, 3 }
  0xfc   : > { %vm992_vm10 = vmor %vm978_vm4, %vm982_vm2  ;;  %v995_v53 = vsel %vm991_vm13, 1, %v1670_v2  ;;  %v998_v29 = vadd.s32 %v994_v16, %v970_v12  ;;  %vm1061_vm4 = vcmp.lt.f32.partialorder %v2472_v22, %v2153_v14  ;;  %vm2881_vm13 = vcmp.eq.f32.partialorder %v2370_v63, %v2153_v14 }
  0xfd   : > { %vm993_vm3 = vmor %vm2880_vm5, %vm983_vm8  ;;  %v996_v24 = vsel %vm992_vm10, 1, %v1670_v2  ;;  %v999_v36 = vadd.s32 %v995_v53, %v971_v7  ;;  %vm1069_vm8 = vcmp.gt.s32.totalorder %v2321_v40, 8  ;;  %v1078_v54 = vsel %vm1060_vm15, 1, %v1670_v2 }
  0xfe   : > { %v997_v33 = vsel %vm993_vm3, 1, %v1670_v2  ;;  %vm1014_vm11 = vmand %vm1008_vm1, %vm1012_vm7  ;;  %v1000_v38 = vadd.s32 %v996_v24, %v972_v13  ;;  %vm2882_vm1 = vcmp.lt.f32.partialorder %v2367_v58, %v2149_v3  ;;  %v1079_v25 = vsel %vm1061_vm4, 1, %v1670_v2 }
  0xff   : > { %vm1015_vm10 = vmand %vm2881_vm13, %vm1012_vm7  ;;  %v1001_v42 = vadd.s32 %v997_v33, %v973_v4  ;;  %vm2883_vm7 = vcmp.lt.f32.partialorder %v2370_v63, %v2153_v14  ;;  %vm1097_vm2 = vcmp.gt.s32.totalorder %v2321_v40, 9  ;;  %vm2884_vm15 = vcmp.eq.f32.partialorder %v2367_v58, %v2180_v61 }
 0x100   : > { %vm1018_vm3 = vmor %vm2882_vm1, %vm1014_vm11  ;;  %vm1088_vm11 = vcmp.lt.f32.partialorder %v2524_v41, %v2149_v3  ;;  %vm1089_vm1 = vcmp.lt.f32.partialorder %v2527_v18, %v2153_v14  ;;  %vm2885_vm4 = vcmp.lt.f32.partialorder %v2367_v58, %v2180_v61  ;;  %v1143_v12 = vperm.slane %v2206_v48, 3 }
 0x101   : > { %vm1019_vm13 = vmor %vm2883_vm7, %vm1015_vm10  ;;  %v1022_v28 = vsel %vm1018_vm3, 1, %v1670_v2  ;;  %vm2886_vm10 = vcmp.eq.f32.partialorder %v2370_v63, %v2206_v48  ;;  %vm2887_vm3 = vcmp.lt.f32.partialorder %v2370_v63, %v2206_v48  ;;  %v1106_v21 = vsel %vm1088_vm11, 1, %v1670_v2 }
 0x102   : > { %vm1020_vm5 = vmor %vm2885_vm4, %vm2884_vm15  ;;  %v1023_v45 = vsel %vm1019_vm13, 1, %v1670_v2  ;;  %v1026_v57 = vadd.s32 %v1022_v28, %v998_v29  ;;  %vm1090_vm13 = vcmp.lt.f32.partialorder %v2524_v41, %v2180_v61  ;;  %v1107_v51 = vsel %vm1089_vm1, 1, %v1670_v2 }
 0x103   : > { %vm1021_vm7 = vmor %vm2887_vm3, %vm2886_vm10  ;;  %v1024_v15 = vsel %vm1020_vm5, 1, %v1670_v2  ;;  %v1027_v8 = vadd.s32 %v1023_v45, %v999_v36  ;;  %vm1125_vm5 = vcmp.gt.s32.totalorder %v2321_v40, 10  ;;  %vm1117_vm1 = vcmp.lt.f32.partialorder %v2561_v43, %v2153_v14 }
 0x104   : > { %v1025_v50 = vsel %vm1021_vm7, 1, %v1670_v2  ;;  %v1028_v37 = vadd.s32 %v1024_v15, %v1000_v38  ;;  %vm1048_vm15 = vmor %vm1034_vm0, %vm1038_vm6  ;;  %v1054_v47 = vadd.s32 %v1050_v17, %v1026_v57  ;;  %vm1116_vm6 = vcmp.lt.f32.partialorder %v2558_v46, %v2149_v3 }
 0x105   : > { %v1029_v1 = vadd.s32 %v1025_v50, %v1001_v42  ;;  %vm1049_vm11 = vmor %vm1035_vm12, %vm1039_vm9  ;;  %v1052_v58 = vsel %vm1048_vm15, 1, %v1670_v2  ;;  %v1055_v63 = vadd.s32 %v1051_v23, %v1027_v8  ;;  %vm2888_vm12 = vcmp.eq.f32.partialorder %v2472_v22, %v2206_v48 }
 0x106   : > { %v1053_v19 = vsel %vm1049_vm11, 1, %v1670_v2  ;;  %v1056_v56 = vadd.s32 %v1052_v58, %v1028_v37  ;;  %vm1072_vm0 = vmand %vm1066_vm14, %vm1069_vm8  ;;  %v1082_v20 = vadd.s32 %v1078_v54, %v1054_v47  ;;  %vm1091_vm4 = vcmp.lt.f32.partialorder %v2527_v18, %v2206_v48 }
 0x107   : > { %v1057_v0 = vadd.s32 %v1053_v19, %v1029_v1  ;;  %vm1073_vm9 = vmand %vm2888_vm12, %vm1069_vm8  ;;  %v1083_v26 = vadd.s32 %v1079_v25, %v1055_v63  ;;  %vm1094_vm10 = vcmp.eq.f32.partialorder %v2524_v41, %v2180_v61  ;;  %vm2889_vm14 = vcmp.lt.f32.partialorder %v2464_v39, %v2180_v61 }
 0x108   : > { %vm1076_vm3 = vmor %vm2889_vm14, %vm1072_vm0  ;;  %vm1095_vm7 = vcmp.eq.f32.partialorder %v2527_v18, %v2206_v48  ;;  %v1110_v5 = vadd.s32 %v1106_v21, %v1082_v20  ;;  %vm1118_vm15 = vcmp.lt.f32.partialorder %v2558_v46, %v2180_v61  ;;  %v1134_v35 = vsel %vm1116_vm6, 1, %v1670_v2 }
 0x109   : > { %vm2890_vm8 = vcmp.lt.f32.partialorder %v2472_v22, %v2206_v48  ;;  %v1080_v32 = vsel %vm1076_vm3, 1, %v1670_v2  ;;  %v1111_v27 = vadd.s32 %v1107_v51, %v1083_v26  ;;  %v1135_v60 = vsel %vm1117_vm1, 1, %v1670_v2  ;;  %vm1100_vm0 = vmand %vm1094_vm10, %vm1097_vm2 }
 0x10a   : > { %vm1077_vm11 = vmor %vm2890_vm8, %vm1073_vm9  ;;  %v1084_v6 = vadd.s32 %v1080_v32, %v1056_v56  ;;  %vm1119_vm6 = vcmp.lt.f32.partialorder %v2561_v43, %v2206_v48  ;;  %vm1122_vm12 = vcmp.eq.f32.partialorder %v2558_v46, %v2180_v61  ;;  %vm1123_vm9 = vcmp.eq.f32.partialorder %v2561_v43, %v2206_v48 }
 0x10b   : > { %v1081_v52 = vsel %vm1077_vm11, 1, %v1670_v2  ;;  %vm1101_vm1 = vmand %vm1095_vm7, %vm1097_vm2  ;;  %vm1144_vm10 = vcmp.lt.f32.partialorder %v1142_v49, %v2149_v3  ;;  %v1138_v39 = vadd.s32 %v1134_v35, %v1110_v5  ;;  %v1139_v13 = vadd.s32 %v1135_v60, %v1111_v27 }
 0x10c   : > { %v1085_v7 = vadd.s32 %v1081_v52, %v1057_v0  ;;  %vm1104_vm14 = vmor %vm1090_vm13, %vm1100_vm0  ;;  %vm1145_vm3 = vcmp.lt.f32.partialorder %v1143_v12, %v2153_v14  ;;  %vm1146_vm8 = vcmp.lt.f32.partialorder %v1142_v49, %v2180_v61  ;;  %vm1147_vm7 = vcmp.lt.f32.partialorder %v1143_v12, %v2206_v48 }
 0x10d   : > { %vm1105_vm2 = vmor %vm1091_vm4, %vm1101_vm1  ;;  %v1108_v4 = vsel %vm1104_vm14, 1, %v1670_v2  ;;  %v1162_v22 = vsel %vm1144_vm10, 1, %v1670_v2  ;;  %v1163_v16 = vsel %vm1145_vm3, 1, %v1670_v2  ;;  %vm1150_vm11 = vcmp.eq.f32.partialorder %v1142_v49, %v2180_v61 }
 0x10e   : > { %v1109_v53 = vsel %vm1105_vm2, 1, %v1670_v2  ;;  %v1112_v17 = vadd.s32 %v1108_v4, %v1084_v6  ;;  %vm1128_vm13 = vmand %vm1122_vm12, %vm1125_vm5  ;;  %vm1151_vm4 = vcmp.eq.f32.partialorder %v1143_v12, %v2206_v48  ;;  %vm1153_vm1 = vcmp.gt.s32.totalorder %v2321_v40, 11 }
 0x10f   : > { %v1113_v23 = vadd.s32 %v1109_v53, %v1085_v7  ;;  %vm1129_vm0 = vmand %vm1123_vm9, %vm1125_vm5  ;;  %v1170_v24 = vperm.slane %v2180_v61, 4  ;;  %v1171_v29 = vperm.slane %v2206_v48, 4  ;;  %v1166_v33 = vadd.s32 %v1162_v22, %v1138_v39 }
 0x110   : > { %vm1132_vm12 = vmor %vm1118_vm15, %vm1128_vm13  ;;  %v1167_v36 = vadd.s32 %v1163_v16, %v1139_v13  ;;  %vm1181_vm10 = vcmp.gt.s32.totalorder %v2321_v40, 12  ;;  %v1198_v38 = vperm.slane %v2180_v61, 5  ;;  %v1199_v18 = vperm.slane %v2206_v48, 5 }
 0x111   : > { %vm1133_vm5 = vmor %vm1119_vm6, %vm1129_vm0  ;;  %v1136_v41 = vsel %vm1132_vm12, 1, %v1670_v2  ;;  %vm1172_vm9 = vcmp.lt.f32.partialorder %v1170_v24, %v2149_v3  ;;  %vm1173_vm14 = vcmp.lt.f32.partialorder %v1171_v29, %v2153_v14  ;;  %vm1178_vm3 = vcmp.eq.f32.partialorder %v1170_v24, %v2180_v61 }
 0x112   : > { %v1137_v42 = vsel %vm1133_vm5, 1, %v1670_v2  ;;  %v1140_v54 = vadd.s32 %v1136_v41, %v1112_v17  ;;  %vm1156_vm15 = vmand %vm1150_vm11, %vm1153_vm1  ;;  %vm1209_vm6 = vcmp.gt.s32.totalorder %v2321_v40, 13  ;;  %vm1179_vm13 = vcmp.eq.f32.partialorder %v1171_v29, %v2206_v48 }
 0x113   : > { %v1141_v25 = vadd.s32 %v1137_v42, %v1113_v23  ;;  %vm1157_vm2 = vmand %vm1151_vm4, %vm1153_vm1  ;;  %v1190_v28 = vsel %vm1172_vm9, 1, %v1670_v2  ;;  %v1191_v45 = vsel %vm1173_vm14, 1, %v1670_v2  ;;  %vm1200_vm11 = vcmp.lt.f32.partialorder %v1198_v38, %v2149_v3 }
 0x114   : > { %vm1160_vm0 = vmor %vm1146_vm8, %vm1156_vm15  ;;  %v1194_v57 = vadd.s32 %v1190_v28, %v1166_v33  ;;  %v1195_v46 = vadd.s32 %v1191_v45, %v1167_v36  ;;  %vm1201_vm12 = vcmp.lt.f32.partialorder %v1199_v18, %v2153_v14  ;;  %vm823_vm5 = vcmp.ge.f32.partialorder %v2149_v3, 1.0 }
 0x115   : > { %vm1161_vm4 = vmor %vm1147_vm7, %vm1157_vm2  ;;  %v1164_v43 = vsel %vm1160_vm0, 1, %v1670_v2  ;;  %vm1174_vm1 = vcmp.lt.f32.partialorder %v1170_v24, %v2180_v61  ;;  %vm1175_vm9 = vcmp.lt.f32.partialorder %v1171_v29, %v2206_v48  ;;  %v1226_v15 = vperm.slane %v2180_v61, 6 }
 0x116   : > { %v1165_v8 = vsel %vm1161_vm4, 1, %v1670_v2  ;;  %v1168_v21 = vadd.s32 %v1164_v43, %v1140_v54  ;;  %vm1184_vm8 = vmand %vm1178_vm3, %vm1181_vm10  ;;  %vm1202_vm14 = vcmp.lt.f32.partialorder %v1198_v38, %v2180_v61  ;;  %v1218_v50 = vsel %vm1200_vm11, 1, %v1670_v2 }
 0x117   : > { %v1169_v37 = vadd.s32 %v1165_v8, %v1141_v25  ;;  %vm1185_vm7 = vmand %vm1179_vm13, %vm1181_vm10  ;;  %vm1206_vm15 = vcmp.eq.f32.partialorder %v1198_v38, %v2180_v61  ;;  %v1219_v47 = vsel %vm1201_vm12, 1, %v1670_v2  ;;  %v1227_v51 = vperm.slane %v2206_v48, 6 }
 0x118   : > { %vm1188_vm0 = vmor %vm1174_vm1, %vm1184_vm8  ;;  %vm1207_vm3 = vcmp.eq.f32.partialorder %v1199_v18, %v2206_v48  ;;  %v1222_v1 = vadd.s32 %v1218_v50, %v1194_v57  ;;  %v1223_v58 = vadd.s32 %v1219_v47, %v1195_v46  ;;  %vm1228_vm11 = vcmp.lt.f32.partialorder %v1226_v15, %v2149_v3 }
 0x119   : > { %vm1189_vm4 = vmor %vm1175_vm9, %vm1185_vm7  ;;  %v1192_v63 = vsel %vm1188_vm0, 1, %v1670_v2  ;;  %vm1203_vm10 = vcmp.lt.f32.partialorder %v1199_v18, %v2206_v48  ;;  %vm1229_vm13 = vcmp.lt.f32.partialorder %v1227_v51, %v2153_v14  ;;  %vm1230_vm12 = vcmp.lt.f32.partialorder %v1226_v15, %v2180_v61 }
 0x11a   : > { %vm819_vm2 = vcmp.le.f32.partialorder %v2149_v3, 0.0  ;;  %vm825_vm1 = vcmp.ge.f32.partialorder %v2180_v61, 1.0  ;;  %v1193_v19 = vsel %vm1189_vm4, 1, %v1670_v2  ;;  %v1196_v56 = vadd.s32 %v1192_v63, %v1168_v21  ;;  %vm1212_vm9 = vmand %vm1206_vm15, %vm1209_vm6 }
 0x11b   : > { %vm1234_vm8 = vcmp.eq.f32.partialorder %v1226_v15, %v2180_v61  ;;  %v1246_v20 = vsel %vm1228_vm11, 1, %v1670_v2  ;;  %v1197_v0 = vadd.s32 %v1193_v19, %v1169_v37  ;;  %vm1213_vm7 = vmand %vm1207_vm3, %vm1209_vm6  ;;  %vm1235_vm0 = vcmp.eq.f32.partialorder %v1227_v51, %v2206_v48 }
 0x11c   : > { %v1247_v26 = vsel %vm1229_vm13, 1, %v1670_v2  ;;  %v1254_v5 = vperm.slane %v2180_v61, 7  ;;  %vm1216_vm4 = vmor %vm1202_vm14, %vm1212_vm9  ;;  %vm1237_vm15 = vcmp.gt.s32.totalorder %v2321_v40, 14  ;;  %v1250_v35 = vadd.s32 %v1246_v20, %v1222_v1 }
 0x11d   : > { %v1251_v32 = vadd.s32 %v1247_v26, %v1223_v58  ;;  %v1255_v27 = vperm.slane %v2206_v48, 7  ;;  %vm1217_vm11 = vmor %vm1203_vm10, %vm1213_vm7  ;;  %v1220_v60 = vsel %vm1216_vm4, 1, %v1670_v2  ;;  %vm1231_vm6 = vcmp.lt.f32.partialorder %v1227_v51, %v2206_v48 }
 0x11e   : > { %vm1256_vm3 = vcmp.lt.f32.partialorder %v1254_v5, %v2149_v3  ;;  %vm2755_vm13 = vcmp.lt.f32.partialorder %v1254_v5, %v2180_v61  ;;  %v1221_v52 = vsel %vm1217_vm11, 1, %v1670_v2  ;;  %v1224_v6 = vadd.s32 %v1220_v60, %v1196_v56  ;;  %vm1240_vm14 = vmand %vm1234_vm8, %vm1237_vm15 }
 0x11f   : > { %vm1257_vm10 = vcmp.lt.f32.partialorder %v1255_v27, %v2153_v14  ;;  %vm1259_vm9 = vcmp.lt.f32.partialorder %v1255_v27, %v2206_v48  ;;  %v814_v12 = vsub.f32 1.0, %v2325_v44  ;;  %v1225_v7 = vadd.s32 %v1221_v52, %v1197_v0  ;;  %vm1241_vm7 = vmand %vm1235_vm0, %vm1237_vm15 }
 0x120   : > { %v1274_v39 = vsel %vm1256_vm3, 1, %v1670_v2  ;;  %v1275_v13 = vsel %vm1257_vm10, 1, %v1670_v2  ;;  %vm2893_vm8 = vcmp.lt.f32.partialorder %v1781_v9, 0.53333336  ;;  %v827_v22 = vsel %vm823_vm5, 1.0, %v2333_v62  ;;  %vm1244_vm4 = vmor %vm1230_vm12, %vm1240_vm14 }
 0x121   : > { %v816_v4 = vsel %vm2893_vm8, %v2303_v31, %v812_v55  ;;  %v1278_v40 = vadd.s32 %v1274_v39, %v1250_v35  ;;  %v1279_v16 = vadd.s32 %v1275_v13, %v1251_v32  ;;  %vm2894_vm0 = vcmp.lt.f32.partialorder %v1783_v10, 0.53333336  ;;  %vm1245_vm15 = vmor %vm1231_vm6, %vm1241_vm7 }
 0x122   : > { %v817_v53 = vsel %vm2894_vm0, %v2309_v34, %v813_v59  ;;  %v1248_v9 = vsel %vm1244_vm4, 1, %v1670_v2  ;;  %v1276_v31 = vsel %vm2755_vm13, 1, %v1670_v2  ;;  %v1277_v55 = vsel %vm1259_vm9, 1, %v1670_v2 }
 0x123   : > { %v1249_v62 = vsel %vm1245_vm15, 1, %v1670_v2  ;;  %v1252_v17 = vadd.s32 %v1248_v9, %v1224_v6  ;;  %v1282_v23 = vcvt.s32.f32 %v1278_v40  ;;  %v1283_v24 = vcvt.s32.f32 %v1279_v16 }
 0x124   : > { %vm820_vm5 = vcmp.le.f32.partialorder %v2153_v14, 0.0  ;;  %vm826_vm12 = vcmp.ge.f32.partialorder %v2206_v48, 1.0  ;;  %vm2895_vm11 = vcmp.ge.f32.partialorder %v2153_v14, 1.0  ;;  %v1253_v34 = vadd.s32 %v1249_v62, %v1225_v7 }
 0x125   : > { %v828_v10 = vsel %vm2895_vm11, 1.0, %v816_v4  ;;  %vm2896_vm6 = vcmp.lt.f32.partialorder %v1786_v11, 0.53333336  ;;  %v1280_v29 = vadd.s32 %v1276_v31, %v1252_v17  ;;  %v1286_v33 = vadd.f32 1.0, %v1282_v23 }
 0x126   : > { %v818_v59 = vsel %vm2896_vm6, %v2325_v44, %v814_v12  ;;  %v1287_v36 = vadd.f32 1.0, %v1283_v24  ;;  %vm821_vm3 = vcmp.le.f32.partialorder %v2180_v61, 0.0  ;;  %v829_v2 = vsel %vm825_vm1, 1.0, %v817_v53 }
 0x127   : > { %v831_v38 = vsel %vm819_vm2, 0.0, %v827_v22  ;;  %v1281_v41 = vadd.s32 %v1277_v55, %v1253_v34  ;;  %v832_v18 = vsel %vm820_vm5, 0.0, %v828_v10  ;;  %v1284_v14 = vcvt.s32.f32 %v1280_v29 }
 0x128   : > { %v1290_v42 = vmul.f32 0.05882353, %v1286_v33  ;;  %v1291_v54 = vmul.f32 0.05882353, %v1287_v36  ;;  %vm822_vm13 = vcmp.le.f32.partialorder %v2206_v48, 0.0  ;;  %v830_v11 = vsel %vm826_vm12, 1.0, %v818_v59 }
 0x129   : > { %v1285_v44 = vcvt.s32.f32 %v1281_v41  ;;  %v1288_v25 = vadd.f32 1.0, %v1284_v14  ;;  %v833_v45 = vsel %vm821_vm3, 0.0, %v829_v2  ;;  %v834_v46 = vsel %vm822_vm13, 0.0, %v830_v11 }
 0x12a   : > { %v1294_v28 = vsub.f32 %v831_v38, %v1290_v42  ;;  %v1295_v61 = vsub.f32 %v832_v18, %v1291_v54  ;;  %vm1319_vm2 = vcmask 1040384   ;;  %vm1324_vm1 = vcmp.lt.s32.totalorder %v835_v30, 256 }
 0x12b   : > { %v1289_v57 = vadd.f32 1.0, %v1285_v44  ;;  %v1292_v3 = vmul.f32 0.05882353, %v1288_v25 }
 0x12c   : > { %v1298_v8 = vmul.f32 %v1294_v28, %v1294_v28  ;;  %v1299_v50 = vmul.f32 %v1295_v61, %v1295_v61 }
 0x12d   : > { %v1293_v43 = vmul.f32 0.05882353, %v1289_v57  ;;  %v1296_v15 = vsub.f32 %v833_v45, %v1292_v3 }
 0x12f   : > { %v1297_v21 = vsub.f32 %v834_v46, %v1293_v43  ;;  %v1300_v37 = vmul.f32 %v1296_v15, %v1296_v15 }
 0x131   : > { %v1301_v47 = vmul.f32 %v1297_v21, %v1297_v21  ;;  %v1302_v51 = vadd.f32 %v1300_v37, %v1298_v8 }
 0x133   : > { %v1309_v48 = vadd.f32 %v1301_v47, %v1299_v50  ;;  %v1303_v1 = vrot.slane %v1302_v51, 4 }
 0x135   : > { %v1310_v58 = vrot.slane %v1309_v48, 4  ;;  %v1304_v63 = vadd.f32 %v1303_v1, %v1302_v51 }
 0x137   : > { %v1311_v19 = vadd.f32 %v1310_v58, %v1309_v48  ;;  %v1305_v56 = vrot.slane %v1304_v63, 2 }
 0x139   : > { %v1312_v20 = vrot.slane %v1311_v19, 2  ;;  %v1306_v0 = vadd.f32 %v1305_v56, %v1304_v63 }
 0x13b   : > { %v1313_v26 = vadd.f32 %v1312_v20, %v1311_v19  ;;  %v1307_v5 = vrot.slane %v1306_v0, 1 }
 0x13d   : > { %v1314_v35 = vrot.slane %v1313_v26, 1  ;;  %v1308_v32 = vadd.f32 %v1307_v5, %v1306_v0 }
 0x13f   : > { %v1315_v27 = vadd.f32 %v1314_v35, %v1313_v26 }
 0x141   : > { %v1318_v60 = vrot.slane %v1315_v27, 7 }
 0x143   : > { %v1320_v49 = vsel %vm1319_vm2, %v1308_v32, %v1318_v60 }
 0x144   : > { %1326 = vst.msk [vmem:[%s136_s30] sm:$0x3] %vm1324_vm1, %v1320_v49 }
 0x145   : > { %1600 = shalt.err (!%p1597_p7)
}
 0x146   : > { %1433 = dma.vmem_to_hbm [thread:$0]  (%p1731_p11), %s1341_s2, 32, %s1343_s3, %s1328_s10  }
 0x147 PF: > { %s1354_s21 = sand.u32 1, %s1627_s6   ;;  %p1440_p8 = pnand %p1415_p9, %p1735_p12 }
 0x148   : > { %s1355_s22 = scalar_lea.sflag [#allocation4], %s1354_s21 }
 0x149   : > { %p1441_p10 = pneg %p1440_p8 }
 0x14b   : > { %1622 = dma.done.wait (%p1441_p10), %s1355_s22, 32  }
 0x14c   : > { %1624 = vsyncadd (%p1441_p10), %s1355_s22, 4294967264  ;;  %p14_p1 = scmp.ge.s32.totalorder %s1706_s12, 4   ;;  %s2897_s6 = smov %s1631_s7 }
 0x14d   : > { %s2898_s7 = smov %s1635_s8  ;;  %s2899_s8 = smov %s1718_s15 }
 0x14e   : > { %s2900_s9 = smov %s1706_s12  ;;  %16 = sbr.rel (!%p14_p1) target bundleno = 5 (0x5), region = 69 }
 0x153   :  { %1361 = vsyncpa [#allocation3], 1 }
 0x154   :  { %1363 = vsyncpa [#allocation3 + $0x1], 1 }
 0x155   :  { %1364 = vsyncpa [#allocation4], 1 }
 0x156   :  { %1366 = vsyncpa [#allocation4 + $0x1], 1 }

</bundles_post_ra>
